<compile_context>
chip_gen: v5e
topology: v5e:2x2
jax: 0.10.0
libtpu: 0.0.40
codegen_flags: <defaults>
</compile_context>

<pallas_src>
import functools

import jax
import jax.numpy as jnp
import numpy as np
from jax import lax
from jax.experimental import pallas as pl
from jax.experimental.pallas import tpu as pltpu


def _rnnlm_kernel(tok_ref, wxh_ref, whh_ref, bh_ref, whq_ref,
                  o_ref, xproj_ref, *, seq_len, batch_tile, mxu_dtype):
    T, Bt = seq_len, batch_tile
    TB = T * Bt
    V, H = wxh_ref.shape

    # One-hot embedding built in-register from int32 tokens (time-major rows).
    tok = tok_ref[0]                                             # (TB, 1) int32
    lane = jax.lax.broadcasted_iota(jnp.int32, (TB, V), 1)
    onehot = (lane == tok).astype(mxu_dtype)                     # (TB, V)

    # Input projection + bias for every timestep in one MXU matmul (f32 acc).
    xproj_ref[...] = (
        jnp.dot(onehot, wxh_ref[...], preferred_element_type=jnp.float32)
        + bh_ref[...].astype(jnp.float32))                       # (TB, H)

    whh = whh_ref[...]                                           # (H, H)
    whq = whq_ref[...]                                           # (H, V)

    def step(t, h):
        # tanh recurrence (h kept in f32; MXU operands in mxu_dtype).
        row = pl.multiple_of(t * Bt, Bt)
        xp = xproj_ref[pl.ds(row, Bt), :]                        # (Bt, H)
        h = jnp.tanh(xp + jnp.dot(h.astype(mxu_dtype), whh,
                                  preferred_element_type=jnp.float32))
        # Fused output projection; lane-dense (Bt, V) store, batch-major layout.
        col = pl.multiple_of(t * V, V)
        o_ref[0, :, pl.ds(col, V)] = jnp.dot(
            h.astype(mxu_dtype), whq,
            preferred_element_type=jnp.float32).astype(o_ref.dtype)
        return h

    lax.fori_loop(0, T, step, jnp.zeros((Bt, H), jnp.float32), unroll=True)


def _pick_batch_tile(B):
    """Largest multiple of 8 dividing B (cap 256), keeping >=2 tiles if we can."""
    best = 8
    for bt in range(8, min(B, 256) + 1, 8):
        if B % bt == 0:
            best = bt
    if best == B and B >= 16 and (B // 2) % 8 == 0:
        best = B // 2          # keep 2 tiles -> both v7x TensorCores busy
    return best


def rnnlm_forward(X, w_xh, w_hh, b_h, w_hq, *, batch_tile=None,
                  mxu_dtype=jnp.float32, single_buffer_weights=True):
    """Y[b, t] = H_t[b] @ W_hq, matching RNNLMScratch.forward(X)."""
    B, T = X.shape
    V, H = w_xh.shape
    Bt = _pick_batch_tile(B) if batch_tile is None else batch_tile
    # TODO(synk): no padding path for B not a multiple of 8.
    assert B % Bt == 0 and Bt % 8 == 0, "batch must tile into multiples of 8"
    nb = B // Bt
    TB = T * Bt

    # Time-major, batch-tiled tokens: tok_tm[g, t*Bt + j, 0] = X[g*Bt + j, t].
    tok_tm = (X.astype(jnp.int32)
                .reshape(nb, Bt, T)
                .transpose(0, 2, 1)
                .reshape(nb, TB, 1))
    wxh = w_xh.astype(mxu_dtype)
    whh = w_hh.astype(mxu_dtype)
    whq = w_hq.astype(mxu_dtype)
    bh2 = b_h.reshape(1, H).astype(jnp.float32)

    kernel = functools.partial(_rnnlm_kernel, seq_len=T, batch_tile=Bt,
                               mxu_dtype=mxu_dtype)

    def _call(use_single_buffer):
        def w_spec(shape):
            kwargs = {}
            if use_single_buffer:
                # Grid-invariant operands: no re-DMA, so one buffer suffices.
                kwargs["pipeline_mode"] = pl.Buffered(1)
            return pl.BlockSpec(shape, lambda g: (0,) * len(shape), **kwargs)

        grid_spec = pltpu.PrefetchScalarGridSpec(
            num_scalar_prefetch=0,
            grid=(nb,),
            in_specs=[
                pl.BlockSpec((1, TB, 1), lambda g: (g, 0, 0)),   # tokens
                w_spec((V, H)),                                  # W_xh
                w_spec((H, H)),                                  # W_hh
                w_spec((1, H)),                                  # b_h
                w_spec((H, V)),                                  # W_hq
            ],
            out_specs=pl.BlockSpec((1, Bt, T * V), lambda g: (g, 0, 0)),
            scratch_shapes=[pltpu.VMEM((TB, H), jnp.float32)],   # x@W_xh + b_h
        )
        return pl.pallas_call(
            kernel,
            grid_spec=grid_spec,
            out_shape=jax.ShapeDtypeStruct((nb, Bt, T * V), jnp.float32),
            compiler_params=pltpu.CompilerParams(
                dimension_semantics=("parallel",),
                vmem_limit_bytes=32 * 1024 * 1024),
        )(tok_tm, wxh, whh, bh2, whq)

    try:
        out_flat = _call(single_buffer_weights)
    except Exception:
        if not single_buffer_weights:
            raise
        # pl.Buffered(1) unavailable on this jax/backend -> default buffering.
        out_flat = _call(False)

    # (nb, Bt, T*V) is already batch-major: pure metadata reshape, no transpose.
    return out_flat.reshape(B, T, V)


def _reference(X, w_xh, w_hh, b_h, w_hq):
    """Pure-JAX replica of the PyTorch forward."""
    B, T = X.shape
    V, H = w_xh.shape
    embs = jax.nn.one_hot(X.T, V, dtype=jnp.float32)             # (T, B, V)

    def step(h, e):
        h = jnp.tanh(e @ w_xh + h @ w_hh + b_h)
        return h, h

    _, hs = jax.lax.scan(step, jnp.zeros((B, H), jnp.float32), embs)  # (T,B,H)
    return jnp.transpose(hs @ w_hq, (1, 0, 2))                   # (B, T, V)


if __name__ == "__main__":
    B, T = 16, 8            # auto batch_tile -> Bt=8, nb=2 (both v7x TCs busy)
    V, H = 128, 64          # vocab lane-dense (multiple of 128)
    sigma = 0.1

    key = jax.random.PRNGKey(0)
    kx, kxh, khh, kbh, khq = jax.random.split(key, 5)

    X = jax.random.randint(kx, (B, T), 0, V, dtype=jnp.int32)
    w_xh = jax.random.normal(kxh, (V, H), dtype=jnp.float32) * sigma
    w_hh = jax.random.normal(khh, (H, H), dtype=jnp.float32) * sigma
    b_h = jax.random.normal(kbh, (H,), dtype=jnp.float32) * sigma
    w_hq = jax.random.normal(khq, (H, V), dtype=jnp.float32) * sigma

    out = rnnlm_forward(X, w_xh, w_hh, b_h, w_hq)
    out = jax.block_until_ready(out)

    ref = _reference(X, w_xh, w_hh, b_h, w_hq)
    np.testing.assert_allclose(np.asarray(out), np.asarray(ref),
                               rtol=1e-3, atol=1e-3)

    print("KERNEL_OK")
</pallas_src>

<mosaic_0001>
module attributes {stable_mosaic.version = 11 : i64} {
  func.func @_rnnlm_kernel(%arg0: i32, %arg1: memref<1x64x1xi32, #tpu.memory_space<vmem>>, %arg2: memref<128x64xf32, #tpu.memory_space<vmem>>, %arg3: memref<64x64xf32, #tpu.memory_space<vmem>>, %arg4: memref<1x64xf32, #tpu.memory_space<vmem>>, %arg5: memref<64x128xf32, #tpu.memory_space<vmem>>, %arg6: memref<1x8x1024xf32, #tpu.memory_space<vmem>>, %arg7: memref<64x64xf32, #tpu.memory_space<vmem>>) attributes {dimension_semantics = [#tpu.dimension_semantics<parallel>], iteration_bounds = array<i64: 2>, scalar_prefetch = 0 : i64, scratch_operands = 1 : i64, tpu.core_type = #tpu.core_type<tc>, window_params = [{transform_indices = @transform_0, window_bounds = array<i64: 1, 64, 1>}, {pipeline_mode = #tpu.pipeline_mode<synchronous>, transform_indices = @transform_1, window_bounds = array<i64: 128, 64>}, {pipeline_mode = #tpu.pipeline_mode<synchronous>, transform_indices = @transform_2, window_bounds = array<i64: 64, 64>}, {pipeline_mode = #tpu.pipeline_mode<synchronous>, transform_indices = @transform_3, window_bounds = array<i64: 1, 64>}, {pipeline_mode = #tpu.pipeline_mode<synchronous>, transform_indices = @transform_4, window_bounds = array<i64: 64, 128>}, {transform_indices = @transform_5, window_bounds = array<i64: 1, 8, 1024>}]} {
    %c0 = arith.constant 0 : index
    %c0_0 = arith.constant 0 : index
    %c0_1 = arith.constant 0 : index
    %0 = vector.load %arg1[%c0, %c0_0, %c0_1] : memref<1x64x1xi32, #tpu.memory_space<vmem>>, vector<1x64x1xi32>
    %1 = vector.shape_cast %0 : vector<1x64x1xi32> to vector<64x1xi32>
    %2 = tpu.iota {dimensions = array<i32: 1>} : vector<64x128xi32>
    %3 = vector.broadcast %1 : vector<64x1xi32> to vector<64x128xi32>
    %4 = arith.cmpi eq, %2, %3 : vector<64x128xi32>
    %5 = arith.extui %4 : vector<64x128xi1> to vector<64x128xi32>
    %6 = arith.sitofp %5 : vector<64x128xi32> to vector<64x128xf32>
    %c0_2 = arith.constant 0 : index
    %c0_3 = arith.constant 0 : index
    %7 = vector.load %arg2[%c0_2, %c0_3] : memref<128x64xf32, #tpu.memory_space<vmem>>, vector<128x64xf32>
    %cst = arith.constant dense<0.000000e+00> : vector<64x64xf32>
    %8 = tpu.matmul %6, %7, %cst {dimension_numbers = #tpu.dot_dimension_numbers<[1], [0], [0], [1], [0, 0, 1, 1], [], []>} : vector<64x128xf32>, vector<128x64xf32>, vector<64x64xf32> -> vector<64x64xf32>
    %c0_4 = arith.constant 0 : index
    %c0_5 = arith.constant 0 : index
    %9 = vector.load %arg4[%c0_4, %c0_5] : memref<1x64xf32, #tpu.memory_space<vmem>>, vector<1x64xf32>
    %10 = vector.broadcast %9 : vector<1x64xf32> to vector<64x64xf32>
    %11 = arith.addf %8, %10 : vector<64x64xf32>
    %c0_6 = arith.constant 0 : index
    %c0_7 = arith.constant 0 : index
    %12 = vector.load %arg7[%c0_6, %c0_7] : memref<64x64xf32, #tpu.memory_space<vmem>>, vector<64x64xf32>
    tpu.vector_store %arg7[%c0_6, %c0_7], %11 {strides = array<i32>} : memref<64x64xf32, #tpu.memory_space<vmem>>, vector<64x64xf32>,
    %c0_8 = arith.constant 0 : index
    %c0_9 = arith.constant 0 : index
    %13 = vector.load %arg3[%c0_8, %c0_9] : memref<64x64xf32, #tpu.memory_space<vmem>>, vector<64x64xf32>
    %c0_10 = arith.constant 0 : index
    %c0_11 = arith.constant 0 : index
    %14 = vector.load %arg5[%c0_10, %c0_11] : memref<64x128xf32, #tpu.memory_space<vmem>>, vector<64x128xf32>
    %cst_12 = arith.constant 0.000000e+00 : f32
    %15 = vector.broadcast %cst_12 : f32 to vector<8x64xf32>
    %c0_i32 = arith.constant 0 : i32
    %c8_i32 = arith.constant 8 : i32
    %16 = arith.muli %c0_i32, %c8_i32 : i32
    %17 = tpu.assume_multiple %16, 8 : i32
    %18 = arith.index_cast %17 : i32 to index
    %c0_13 = arith.constant 0 : index
    %19 = vector.load %arg7[%18, %c0_13] : memref<64x64xf32, #tpu.memory_space<vmem>>, vector<8x64xf32>
    %cst_14 = arith.constant dense<0.000000e+00> : vector<8x64xf32>
    %20 = tpu.matmul %15, %13, %cst_14 {dimension_numbers = #tpu.dot_dimension_numbers<[1], [0], [0], [1], [0, 0, 1, 1], [], []>} : vector<8x64xf32>, vector<64x64xf32>, vector<8x64xf32> -> vector<8x64xf32>
    %21 = arith.addf %19, %20 : vector<8x64xf32>
    %22 = math.tanh %21 : vector<8x64xf32>
    %c128_i32 = arith.constant 128 : i32
    %23 = arith.muli %c0_i32, %c128_i32 : i32
    %24 = tpu.assume_multiple %23, 128 : i32
    %cst_15 = arith.constant dense<0.000000e+00> : vector<8x128xf32>
    %25 = tpu.matmul %22, %14, %cst_15 {dimension_numbers = #tpu.dot_dimension_numbers<[1], [0], [0], [1], [0, 0, 1, 1], [], []>} : vector<8x64xf32>, vector<64x128xf32>, vector<8x128xf32> -> vector<8x128xf32>
    %c0_16 = arith.constant 0 : index
    %c0_17 = arith.constant 0 : index
    %26 = arith.index_cast %24 : i32 to index
    %27 = vector.load %arg6[%c0_16, %c0_17, %26] : memref<1x8x1024xf32, #tpu.memory_space<vmem>>, vector<1x8x128xf32>
    %28 = vector.shape_cast %27 : vector<1x8x128xf32> to vector<8x128xf32>
    %29 = vector.shape_cast %25 : vector<8x128xf32> to vector<1x8x128xf32>
    tpu.vector_store %arg6[%c0_16, %c0_17, %26], %29 {strides = array<i32>} : memref<1x8x1024xf32, #tpu.memory_space<vmem>>, vector<1x8x128xf32>,
    %c1_i32 = arith.constant 1 : i32
    %c8_i32_18 = arith.constant 8 : i32
    %30 = arith.muli %c1_i32, %c8_i32_18 : i32
    %31 = tpu.assume_multiple %30, 8 : i32
    %32 = arith.index_cast %31 : i32 to index
    %c0_19 = arith.constant 0 : index
    %33 = vector.load %arg7[%32, %c0_19] : memref<64x64xf32, #tpu.memory_space<vmem>>, vector<8x64xf32>
    %cst_20 = arith.constant dense<0.000000e+00> : vector<8x64xf32>
    %34 = tpu.matmul %22, %13, %cst_20 {dimension_numbers = #tpu.dot_dimension_numbers<[1], [0], [0], [1], [0, 0, 1, 1], [], []>} : vector<8x64xf32>, vector<64x64xf32>, vector<8x64xf32> -> vector<8x64xf32>
    %35 = arith.addf %33, %34 : vector<8x64xf32>
    %36 = math.tanh %35 : vector<8x64xf32>
    %c128_i32_21 = arith.constant 128 : i32
    %37 = arith.muli %c1_i32, %c128_i32_21 : i32
    %38 = tpu.assume_multiple %37, 128 : i32
    %cst_22 = arith.constant dense<0.000000e+00> : vector<8x128xf32>
    %39 = tpu.matmul %36, %14, %cst_22 {dimension_numbers = #tpu.dot_dimension_numbers<[1], [0], [0], [1], [0, 0, 1, 1], [], []>} : vector<8x64xf32>, vector<64x128xf32>, vector<8x128xf32> -> vector<8x128xf32>
    %c0_23 = arith.constant 0 : index
    %c0_24 = arith.constant 0 : index
    %40 = arith.index_cast %38 : i32 to index
    %41 = vector.load %arg6[%c0_23, %c0_24, %40] : memref<1x8x1024xf32, #tpu.memory_space<vmem>>, vector<1x8x128xf32>
    %42 = vector.shape_cast %41 : vector<1x8x128xf32> to vector<8x128xf32>
    %43 = vector.shape_cast %39 : vector<8x128xf32> to vector<1x8x128xf32>
    tpu.vector_store %arg6[%c0_23, %c0_24, %40], %43 {strides = array<i32>} : memref<1x8x1024xf32, #tpu.memory_space<vmem>>, vector<1x8x128xf32>,
    %c2_i32 = arith.constant 2 : i32
    %c8_i32_25 = arith.constant 8 : i32
    %44 = arith.muli %c2_i32, %c8_i32_25 : i32
    %45 = tpu.assume_multiple %44, 8 : i32
    %46 = arith.index_cast %45 : i32 to index
    %c0_26 = arith.constant 0 : index
    %47 = vector.load %arg7[%46, %c0_26] : memref<64x64xf32, #tpu.memory_space<vmem>>, vector<8x64xf32>
    %cst_27 = arith.constant dense<0.000000e+00> : vector<8x64xf32>
    %48 = tpu.matmul %36, %13, %cst_27 {dimension_numbers = #tpu.dot_dimension_numbers<[1], [0], [0], [1], [0, 0, 1, 1], [], []>} : vector<8x64xf32>, vector<64x64xf32>, vector<8x64xf32> -> vector<8x64xf32>
    %49 = arith.addf %47, %48 : vector<8x64xf32>
    %50 = math.tanh %49 : vector<8x64xf32>
    %c128_i32_28 = arith.constant 128 : i32
    %51 = arith.muli %c2_i32, %c128_i32_28 : i32
    %52 = tpu.assume_multiple %51, 128 : i32
    %cst_29 = arith.constant dense<0.000000e+00> : vector<8x128xf32>
    %53 = tpu.matmul %50, %14, %cst_29 {dimension_numbers = #tpu.dot_dimension_numbers<[1], [0], [0], [1], [0, 0, 1, 1], [], []>} : vector<8x64xf32>, vector<64x128xf32>, vector<8x128xf32> -> vector<8x128xf32>
    %c0_30 = arith.constant 0 : index
    %c0_31 = arith.constant 0 : index
    %54 = arith.index_cast %52 : i32 to index
    %55 = vector.load %arg6[%c0_30, %c0_31, %54] : memref<1x8x1024xf32, #tpu.memory_space<vmem>>, vector<1x8x128xf32>
    %56 = vector.shape_cast %55 : vector<1x8x128xf32> to vector<8x128xf32>
    %57 = vector.shape_cast %53 : vector<8x128xf32> to vector<1x8x128xf32>
    tpu.vector_store %arg6[%c0_30, %c0_31, %54], %57 {strides = array<i32>} : memref<1x8x1024xf32, #tpu.memory_space<vmem>>, vector<1x8x128xf32>,
    %c3_i32 = arith.constant 3 : i32
    %c8_i32_32 = arith.constant 8 : i32
    %58 = arith.muli %c3_i32, %c8_i32_32 : i32
    %59 = tpu.assume_multiple %58, 8 : i32
    %60 = arith.index_cast %59 : i32 to index
    %c0_33 = arith.constant 0 : index
    %61 = vector.load %arg7[%60, %c0_33] : memref<64x64xf32, #tpu.memory_space<vmem>>, vector<8x64xf32>
    %cst_34 = arith.constant dense<0.000000e+00> : vector<8x64xf32>
    %62 = tpu.matmul %50, %13, %cst_34 {dimension_numbers = #tpu.dot_dimension_numbers<[1], [0], [0], [1], [0, 0, 1, 1], [], []>} : vector<8x64xf32>, vector<64x64xf32>, vector<8x64xf32> -> vector<8x64xf32>
    %63 = arith.addf %61, %62 : vector<8x64xf32>
    %64 = math.tanh %63 : vector<8x64xf32>
    %c128_i32_35 = arith.constant 128 : i32
    %65 = arith.muli %c3_i32, %c128_i32_35 : i32
    %66 = tpu.assume_multiple %65, 128 : i32
    %cst_36 = arith.constant dense<0.000000e+00> : vector<8x128xf32>
    %67 = tpu.matmul %64, %14, %cst_36 {dimension_numbers = #tpu.dot_dimension_numbers<[1], [0], [0], [1], [0, 0, 1, 1], [], []>} : vector<8x64xf32>, vector<64x128xf32>, vector<8x128xf32> -> vector<8x128xf32>
    %c0_37 = arith.constant 0 : index
    %c0_38 = arith.constant 0 : index
    %68 = arith.index_cast %66 : i32 to index
    %69 = vector.load %arg6[%c0_37, %c0_38, %68] : memref<1x8x1024xf32, #tpu.memory_space<vmem>>, vector<1x8x128xf32>
    %70 = vector.shape_cast %69 : vector<1x8x128xf32> to vector<8x128xf32>
    %71 = vector.shape_cast %67 : vector<8x128xf32> to vector<1x8x128xf32>
    tpu.vector_store %arg6[%c0_37, %c0_38, %68], %71 {strides = array<i32>} : memref<1x8x1024xf32, #tpu.memory_space<vmem>>, vector<1x8x128xf32>,
    %c4_i32 = arith.constant 4 : i32
    %c8_i32_39 = arith.constant 8 : i32
    %72 = arith.muli %c4_i32, %c8_i32_39 : i32
    %73 = tpu.assume_multiple %72, 8 : i32
    %74 = arith.index_cast %73 : i32 to index
    %c0_40 = arith.constant 0 : index
    %75 = vector.load %arg7[%74, %c0_40] : memref<64x64xf32, #tpu.memory_space<vmem>>, vector<8x64xf32>
    %cst_41 = arith.constant dense<0.000000e+00> : vector<8x64xf32>
    %76 = tpu.matmul %64, %13, %cst_41 {dimension_numbers = #tpu.dot_dimension_numbers<[1], [0], [0], [1], [0, 0, 1, 1], [], []>} : vector<8x64xf32>, vector<64x64xf32>, vector<8x64xf32> -> vector<8x64xf32>
    %77 = arith.addf %75, %76 : vector<8x64xf32>
    %78 = math.tanh %77 : vector<8x64xf32>
    %c128_i32_42 = arith.constant 128 : i32
    %79 = arith.muli %c4_i32, %c128_i32_42 : i32
    %80 = tpu.assume_multiple %79, 128 : i32
    %cst_43 = arith.constant dense<0.000000e+00> : vector<8x128xf32>
    %81 = tpu.matmul %78, %14, %cst_43 {dimension_numbers = #tpu.dot_dimension_numbers<[1], [0], [0], [1], [0, 0, 1, 1], [], []>} : vector<8x64xf32>, vector<64x128xf32>, vector<8x128xf32> -> vector<8x128xf32>
    %c0_44 = arith.constant 0 : index
    %c0_45 = arith.constant 0 : index
    %82 = arith.index_cast %80 : i32 to index
    %83 = vector.load %arg6[%c0_44, %c0_45, %82] : memref<1x8x1024xf32, #tpu.memory_space<vmem>>, vector<1x8x128xf32>
    %84 = vector.shape_cast %83 : vector<1x8x128xf32> to vector<8x128xf32>
    %85 = vector.shape_cast %81 : vector<8x128xf32> to vector<1x8x128xf32>
    tpu.vector_store %arg6[%c0_44, %c0_45, %82], %85 {strides = array<i32>} : memref<1x8x1024xf32, #tpu.memory_space<vmem>>, vector<1x8x128xf32>,
    %c5_i32 = arith.constant 5 : i32
    %c8_i32_46 = arith.constant 8 : i32
    %86 = arith.muli %c5_i32, %c8_i32_46 : i32
    %87 = tpu.assume_multiple %86, 8 : i32
    %88 = arith.index_cast %87 : i32 to index
    %c0_47 = arith.constant 0 : index
    %89 = vector.load %arg7[%88, %c0_47] : memref<64x64xf32, #tpu.memory_space<vmem>>, vector<8x64xf32>
    %cst_48 = arith.constant dense<0.000000e+00> : vector<8x64xf32>
    %90 = tpu.matmul %78, %13, %cst_48 {dimension_numbers = #tpu.dot_dimension_numbers<[1], [0], [0], [1], [0, 0, 1, 1], [], []>} : vector<8x64xf32>, vector<64x64xf32>, vector<8x64xf32> -> vector<8x64xf32>
    %91 = arith.addf %89, %90 : vector<8x64xf32>
    %92 = math.tanh %91 : vector<8x64xf32>
    %c128_i32_49 = arith.constant 128 : i32
    %93 = arith.muli %c5_i32, %c128_i32_49 : i32
    %94 = tpu.assume_multiple %93, 128 : i32
    %cst_50 = arith.constant dense<0.000000e+00> : vector<8x128xf32>
    %95 = tpu.matmul %92, %14, %cst_50 {dimension_numbers = #tpu.dot_dimension_numbers<[1], [0], [0], [1], [0, 0, 1, 1], [], []>} : vector<8x64xf32>, vector<64x128xf32>, vector<8x128xf32> -> vector<8x128xf32>
    %c0_51 = arith.constant 0 : index
    %c0_52 = arith.constant 0 : index
    %96 = arith.index_cast %94 : i32 to index
    %97 = vector.load %arg6[%c0_51, %c0_52, %96] : memref<1x8x1024xf32, #tpu.memory_space<vmem>>, vector<1x8x128xf32>
    %98 = vector.shape_cast %97 : vector<1x8x128xf32> to vector<8x128xf32>
    %99 = vector.shape_cast %95 : vector<8x128xf32> to vector<1x8x128xf32>
    tpu.vector_store %arg6[%c0_51, %c0_52, %96], %99 {strides = array<i32>} : memref<1x8x1024xf32, #tpu.memory_space<vmem>>, vector<1x8x128xf32>,
    %c6_i32 = arith.constant 6 : i32
    %c8_i32_53 = arith.constant 8 : i32
    %100 = arith.muli %c6_i32, %c8_i32_53 : i32
    %101 = tpu.assume_multiple %100, 8 : i32
    %102 = arith.index_cast %101 : i32 to index
    %c0_54 = arith.constant 0 : index
    %103 = vector.load %arg7[%102, %c0_54] : memref<64x64xf32, #tpu.memory_space<vmem>>, vector<8x64xf32>
    %cst_55 = arith.constant dense<0.000000e+00> : vector<8x64xf32>
    %104 = tpu.matmul %92, %13, %cst_55 {dimension_numbers = #tpu.dot_dimension_numbers<[1], [0], [0], [1], [0, 0, 1, 1], [], []>} : vector<8x64xf32>, vector<64x64xf32>, vector<8x64xf32> -> vector<8x64xf32>
    %105 = arith.addf %103, %104 : vector<8x64xf32>
    %106 = math.tanh %105 : vector<8x64xf32>
    %c128_i32_56 = arith.constant 128 : i32
    %107 = arith.muli %c6_i32, %c128_i32_56 : i32
    %108 = tpu.assume_multiple %107, 128 : i32
    %cst_57 = arith.constant dense<0.000000e+00> : vector<8x128xf32>
    %109 = tpu.matmul %106, %14, %cst_57 {dimension_numbers = #tpu.dot_dimension_numbers<[1], [0], [0], [1], [0, 0, 1, 1], [], []>} : vector<8x64xf32>, vector<64x128xf32>, vector<8x128xf32> -> vector<8x128xf32>
    %c0_58 = arith.constant 0 : index
    %c0_59 = arith.constant 0 : index
    %110 = arith.index_cast %108 : i32 to index
    %111 = vector.load %arg6[%c0_58, %c0_59, %110] : memref<1x8x1024xf32, #tpu.memory_space<vmem>>, vector<1x8x128xf32>
    %112 = vector.shape_cast %111 : vector<1x8x128xf32> to vector<8x128xf32>
    %113 = vector.shape_cast %109 : vector<8x128xf32> to vector<1x8x128xf32>
    tpu.vector_store %arg6[%c0_58, %c0_59, %110], %113 {strides = array<i32>} : memref<1x8x1024xf32, #tpu.memory_space<vmem>>, vector<1x8x128xf32>,
    %c7_i32 = arith.constant 7 : i32
    %c8_i32_60 = arith.constant 8 : i32
    %114 = arith.muli %c7_i32, %c8_i32_60 : i32
    %115 = tpu.assume_multiple %114, 8 : i32
    %116 = arith.index_cast %115 : i32 to index
    %c0_61 = arith.constant 0 : index
    %117 = vector.load %arg7[%116, %c0_61] : memref<64x64xf32, #tpu.memory_space<vmem>>, vector<8x64xf32>
    %cst_62 = arith.constant dense<0.000000e+00> : vector<8x64xf32>
    %118 = tpu.matmul %106, %13, %cst_62 {dimension_numbers = #tpu.dot_dimension_numbers<[1], [0], [0], [1], [0, 0, 1, 1], [], []>} : vector<8x64xf32>, vector<64x64xf32>, vector<8x64xf32> -> vector<8x64xf32>
    %119 = arith.addf %117, %118 : vector<8x64xf32>
    %120 = math.tanh %119 : vector<8x64xf32>
    %c128_i32_63 = arith.constant 128 : i32
    %121 = arith.muli %c7_i32, %c128_i32_63 : i32
    %122 = tpu.assume_multiple %121, 128 : i32
    %cst_64 = arith.constant dense<0.000000e+00> : vector<8x128xf32>
    %123 = tpu.matmul %120, %14, %cst_64 {dimension_numbers = #tpu.dot_dimension_numbers<[1], [0], [0], [1], [0, 0, 1, 1], [], []>} : vector<8x64xf32>, vector<64x128xf32>, vector<8x128xf32> -> vector<8x128xf32>
    %c0_65 = arith.constant 0 : index
    %c0_66 = arith.constant 0 : index
    %124 = arith.index_cast %122 : i32 to index
    %125 = vector.load %arg6[%c0_65, %c0_66, %124] : memref<1x8x1024xf32, #tpu.memory_space<vmem>>, vector<1x8x128xf32>
    %126 = vector.shape_cast %125 : vector<1x8x128xf32> to vector<8x128xf32>
    %127 = vector.shape_cast %123 : vector<8x128xf32> to vector<1x8x128xf32>
    tpu.vector_store %arg6[%c0_65, %c0_66, %124], %127 {strides = array<i32>} : memref<1x8x1024xf32, #tpu.memory_space<vmem>>, vector<1x8x128xf32>,
    %c8_i32_67 = arith.constant 8 : i32
    return
  }
  func.func @transform_0(%arg0: i32) -> (i32, i32, i32) {
    %c0_i32 = arith.constant 0 : i32
    %c0_i32_0 = arith.constant 0 : i32
    %c0_i32_1 = arith.constant 0 : i32
    return %arg0, %c0_i32, %c0_i32_0 : i32, i32, i32
  }
  func.func @transform_1(%arg0: i32) -> (i32, i32) {
    %c0_i32 = arith.constant 0 : i32
    %c0_i32_0 = arith.constant 0 : i32
    %c0_i32_1 = arith.constant 0 : i32
    return %c0_i32, %c0_i32_0 : i32, i32
  }
  func.func @transform_2(%arg0: i32) -> (i32, i32) {
    %c0_i32 = arith.constant 0 : i32
    %c0_i32_0 = arith.constant 0 : i32
    %c0_i32_1 = arith.constant 0 : i32
    return %c0_i32, %c0_i32_0 : i32, i32
  }
  func.func @transform_3(%arg0: i32) -> (i32, i32) {
    %c0_i32 = arith.constant 0 : i32
    %c0_i32_0 = arith.constant 0 : i32
    %c0_i32_1 = arith.constant 0 : i32
    return %c0_i32, %c0_i32_0 : i32, i32
  }
  func.func @transform_4(%arg0: i32) -> (i32, i32) {
    %c0_i32 = arith.constant 0 : i32
    %c0_i32_0 = arith.constant 0 : i32
    %c0_i32_1 = arith.constant 0 : i32
    return %c0_i32, %c0_i32_0 : i32, i32
  }
  func.func @transform_5(%arg0: i32) -> (i32, i32, i32) {
    %c0_i32 = arith.constant 0 : i32
    %c0_i32_0 = arith.constant 0 : i32
    %c0_i32_1 = arith.constant 0 : i32
    return %arg0, %c0_i32, %c0_i32_0 : i32, i32, i32
  }
}

module attributes {stable_mosaic.version = 11 : i64} {
  func.func @_rnnlm_kernel(%arg0: i32, %arg1: memref<1x64x1xi32, #tpu.memory_space<vmem>>, %arg2: memref<128x64xf32, #tpu.memory_space<vmem>>, %arg3: memref<64x64xf32, #tpu.memory_space<vmem>>, %arg4: memref<1x64xf32, #tpu.memory_space<vmem>>, %arg5: memref<64x128xf32, #tpu.memory_space<vmem>>, %arg6: memref<1x8x1024xf32, #tpu.memory_space<vmem>>, %arg7: memref<64x64xf32, #tpu.memory_space<vmem>>) attributes {dimension_semantics = [#tpu.dimension_semantics<parallel>], iteration_bounds = array<i64: 2>, scalar_prefetch = 0 : i64, scratch_operands = 1 : i64, tpu.core_type = #tpu.core_type<tc>, window_params = [{transform_indices = @transform_0, window_bounds = array<i64: 1, 64, 1>}, {pipeline_mode = #tpu.pipeline_mode<synchronous>, transform_indices = @transform_1, window_bounds = array<i64: 128, 64>}, {pipeline_mode = #tpu.pipeline_mode<synchronous>, transform_indices = @transform_2, window_bounds = array<i64: 64, 64>}, {pipeline_mode = #tpu.pipeline_mode<synchronous>, transform_indices = @transform_3, window_bounds = array<i64: 1, 64>}, {pipeline_mode = #tpu.pipeline_mode<synchronous>, transform_indices = @transform_4, window_bounds = array<i64: 64, 128>}, {transform_indices = @transform_5, window_bounds = array<i64: 1, 8, 1024>}]} {
    %c0 = arith.constant 0 : index
    %c0_0 = arith.constant 0 : index
    %c0_1 = arith.constant 0 : index
    %0 = vector.load %arg1[%c0, %c0_0, %c0_1] : memref<1x64x1xi32, #tpu.memory_space<vmem>>, vector<1x64x1xi32>
    %1 = vector.shape_cast %0 : vector<1x64x1xi32> to vector<64x1xi32>
    %2 = tpu.iota {dimensions = array<i32: 1>} : vector<64x128xi32>
    %3 = vector.broadcast %1 : vector<64x1xi32> to vector<64x128xi32>
    %4 = arith.cmpi eq, %2, %3 : vector<64x128xi32>
    %5 = arith.extui %4 : vector<64x128xi1> to vector<64x128xi32>
    %6 = arith.sitofp %5 : vector<64x128xi32> to vector<64x128xf32>
    %c0_2 = arith.constant 0 : index
    %c0_3 = arith.constant 0 : index
    %7 = vector.load %arg2[%c0_2, %c0_3] : memref<128x64xf32, #tpu.memory_space<vmem>>, vector<128x64xf32>
    %cst = arith.constant dense<0.000000e+00> : vector<64x64xf32>
    %8 = tpu.matmul %6, %7, %cst {dimension_numbers = #tpu.dot_dimension_numbers<[1], [0], [0], [1], [0, 0, 1, 1], [], []>} : vector<64x128xf32>, vector<128x64xf32>, vector<64x64xf32> -> vector<64x64xf32>
    %c0_4 = arith.constant 0 : index
    %c0_5 = arith.constant 0 : index
    %9 = vector.load %arg4[%c0_4, %c0_5] : memref<1x64xf32, #tpu.memory_space<vmem>>, vector<1x64xf32>
    %10 = vector.broadcast %9 : vector<1x64xf32> to vector<64x64xf32>
    %11 = arith.addf %8, %10 : vector<64x64xf32>
    %c0_6 = arith.constant 0 : index
    %c0_7 = arith.constant 0 : index
    %12 = vector.load %arg7[%c0_6, %c0_7] : memref<64x64xf32, #tpu.memory_space<vmem>>, vector<64x64xf32>
    tpu.vector_store %arg7[%c0_6, %c0_7], %11 {strides = array<i32>} : memref<64x64xf32, #tpu.memory_space<vmem>>, vector<64x64xf32>,
    %c0_8 = arith.constant 0 : index
    %c0_9 = arith.constant 0 : index
    %13 = vector.load %arg3[%c0_8, %c0_9] : memref<64x64xf32, #tpu.memory_space<vmem>>, vector<64x64xf32>
    %c0_10 = arith.constant 0 : index
    %c0_11 = arith.constant 0 : index
    %14 = vector.load %arg5[%c0_10, %c0_11] : memref<64x128xf32, #tpu.memory_space<vmem>>, vector<64x128xf32>
    %cst_12 = arith.constant 0.000000e+00 : f32
    %15 = vector.broadcast %cst_12 : f32 to vector<8x64xf32>
    %c0_i32 = arith.constant 0 : i32
    %c8_i32 = arith.constant 8 : i32
    %16 = arith.muli %c0_i32, %c8_i32 : i32
    %17 = tpu.assume_multiple %16, 8 : i32
    %18 = arith.index_cast %17 : i32 to index
    %c0_13 = arith.constant 0 : index
    %19 = vector.load %arg7[%18, %c0_13] : memref<64x64xf32, #tpu.memory_space<vmem>>, vector<8x64xf32>
    %cst_14 = arith.constant dense<0.000000e+00> : vector<8x64xf32>
    %20 = tpu.matmul %15, %13, %cst_14 {dimension_numbers = #tpu.dot_dimension_numbers<[1], [0], [0], [1], [0, 0, 1, 1], [], []>} : vector<8x64xf32>, vector<64x64xf32>, vector<8x64xf32> -> vector<8x64xf32>
    %21 = arith.addf %19, %20 : vector<8x64xf32>
    %22 = math.tanh %21 : vector<8x64xf32>
    %c128_i32 = arith.constant 128 : i32
    %23 = arith.muli %c0_i32, %c128_i32 : i32
    %24 = tpu.assume_multiple %23, 128 : i32
    %cst_15 = arith.constant dense<0.000000e+00> : vector<8x128xf32>
    %25 = tpu.matmul %22, %14, %cst_15 {dimension_numbers = #tpu.dot_dimension_numbers<[1], [0], [0], [1], [0, 0, 1, 1], [], []>} : vector<8x64xf32>, vector<64x128xf32>, vector<8x128xf32> -> vector<8x128xf32>
    %c0_16 = arith.constant 0 : index
    %c0_17 = arith.constant 0 : index
    %26 = arith.index_cast %24 : i32 to index
    %27 = vector.load %arg6[%c0_16, %c0_17, %26] : memref<1x8x1024xf32, #tpu.memory_space<vmem>>, vector<1x8x128xf32>
    %28 = vector.shape_cast %27 : vector<1x8x128xf32> to vector<8x128xf32>
    %29 = vector.shape_cast %25 : vector<8x128xf32> to vector<1x8x128xf32>
    tpu.vector_store %arg6[%c0_16, %c0_17, %26], %29 {strides = array<i32>} : memref<1x8x1024xf32, #tpu.memory_space<vmem>>, vector<1x8x128xf32>,
    %c1_i32 = arith.constant 1 : i32
    %c8_i32_18 = arith.constant 8 : i32
    %30 = arith.muli %c1_i32, %c8_i32_18 : i32
    %31 = tpu.assume_multiple %30, 8 : i32
    %32 = arith.index_cast %31 : i32 to index
    %c0_19 = arith.constant 0 : index
    %33 = vector.load %arg7[%32, %c0_19] : memref<64x64xf32, #tpu.memory_space<vmem>>, vector<8x64xf32>
    %cst_20 = arith.constant dense<0.000000e+00> : vector<8x64xf32>
    %34 = tpu.matmul %22, %13, %cst_20 {dimension_numbers = #tpu.dot_dimension_numbers<[1], [0], [0], [1], [0, 0, 1, 1], [], []>} : vector<8x64xf32>, vector<64x64xf32>, vector<8x64xf32> -> vector<8x64xf32>
    %35 = arith.addf %33, %34 : vector<8x64xf32>
    %36 = math.tanh %35 : vector<8x64xf32>
    %c128_i32_21 = arith.constant 128 : i32
    %37 = arith.muli %c1_i32, %c128_i32_21 : i32
    %38 = tpu.assume_multiple %37, 128 : i32
    %cst_22 = arith.constant dense<0.000000e+00> : vector<8x128xf32>
    %39 = tpu.matmul %36, %14, %cst_22 {dimension_numbers = #tpu.dot_dimension_numbers<[1], [0], [0], [1], [0, 0, 1, 1], [], []>} : vector<8x64xf32>, vector<64x128xf32>, vector<8x128xf32> -> vector<8x128xf32>
    %c0_23 = arith.constant 0 : index
    %c0_24 = arith.constant 0 : index
    %40 = arith.index_cast %38 : i32 to index
    %41 = vector.load %arg6[%c0_23, %c0_24, %40] : memref<1x8x1024xf32, #tpu.memory_space<vmem>>, vector<1x8x128xf32>
    %42 = vector.shape_cast %41 : vector<1x8x128xf32> to vector<8x128xf32>
    %43 = vector.shape_cast %39 : vector<8x128xf32> to vector<1x8x128xf32>
    tpu.vector_store %arg6[%c0_23, %c0_24, %40], %43 {strides = array<i32>} : memref<1x8x1024xf32, #tpu.memory_space<vmem>>, vector<1x8x128xf32>,
    %c2_i32 = arith.constant 2 : i32
    %c8_i32_25 = arith.constant 8 : i32
    %44 = arith.muli %c2_i32, %c8_i32_25 : i32
    %45 = tpu.assume_multiple %44, 8 : i32
    %46 = arith.index_cast %45 : i32 to index
    %c0_26 = arith.constant 0 : index
    %47 = vector.load %arg7[%46, %c0_26] : memref<64x64xf32, #tpu.memory_space<vmem>>, vector<8x64xf32>
    %cst_27 = arith.constant dense<0.000000e+00> : vector<8x64xf32>
    %48 = tpu.matmul %36, %13, %cst_27 {dimension_numbers = #tpu.dot_dimension_numbers<[1], [0], [0], [1], [0, 0, 1, 1], [], []>} : vector<8x64xf32>, vector<64x64xf32>, vector<8x64xf32> -> vector<8x64xf32>
    %49 = arith.addf %47, %48 : vector<8x64xf32>
    %50 = math.tanh %49 : vector<8x64xf32>
    %c128_i32_28 = arith.constant 128 : i32
    %51 = arith.muli %c2_i32, %c128_i32_28 : i32
    %52 = tpu.assume_multiple %51, 128 : i32
    %cst_29 = arith.constant dense<0.000000e+00> : vector<8x128xf32>
    %53 = tpu.matmul %50, %14, %cst_29 {dimension_numbers = #tpu.dot_dimension_numbers<[1], [0], [0], [1], [0, 0, 1, 1], [], []>} : vector<8x64xf32>, vector<64x128xf32>, vector<8x128xf32> -> vector<8x128xf32>
    %c0_30 = arith.constant 0 : index
    %c0_31 = arith.constant 0 : index
    %54 = arith.index_cast %52 : i32 to index
    %55 = vector.load %arg6[%c0_30, %c0_31, %54] : memref<1x8x1024xf32, #tpu.memory_space<vmem>>, vector<1x8x128xf32>
    %56 = vector.shape_cast %55 : vector<1x8x128xf32> to vector<8x128xf32>
    %57 = vector.shape_cast %53 : vector<8x128xf32> to vector<1x8x128xf32>
    tpu.vector_store %arg6[%c0_30, %c0_31, %54], %57 {strides = array<i32>} : memref<1x8x1024xf32, #tpu.memory_space<vmem>>, vector<1x8x128xf32>,
    %c3_i32 = arith.constant 3 : i32
    %c8_i32_32 = arith.constant 8 : i32
    %58 = arith.muli %c3_i32, %c8_i32_32 : i32
    %59 = tpu.assume_multiple %58, 8 : i32
    %60 = arith.index_cast %59 : i32 to index
    %c0_33 = arith.constant 0 : index
    %61 = vector.load %arg7[%60, %c0_33] : memref<64x64xf32, #tpu.memory_space<vmem>>, vector<8x64xf32>
    %cst_34 = arith.constant dense<0.000000e+00> : vector<8x64xf32>
    %62 = tpu.matmul %50, %13, %cst_34 {dimension_numbers = #tpu.dot_dimension_numbers<[1], [0], [0], [1], [0, 0, 1, 1], [], []>} : vector<8x64xf32>, vector<64x64xf32>, vector<8x64xf32> -> vector<8x64xf32>
    %63 = arith.addf %61, %62 : vector<8x64xf32>
    %64 = math.tanh %63 : vector<8x64xf32>
    %c128_i32_35 = arith.constant 128 : i32
    %65 = arith.muli %c3_i32, %c128_i32_35 : i32
    %66 = tpu.assume_multiple %65, 128 : i32
    %cst_36 = arith.constant dense<0.000000e+00> : vector<8x128xf32>
    %67 = tpu.matmul %64, %14, %cst_36 {dimension_numbers = #tpu.dot_dimension_numbers<[1], [0], [0], [1], [0, 0, 1, 1], [], []>} : vector<8x64xf32>, vector<64x128xf32>, vector<8x128xf32> -> vector<8x128xf32>
    %c0_37 = arith.constant 0 : index
    %c0_38 = arith.constant 0 : index
    %68 = arith.index_cast %66 : i32 to index
    %69 = vector.load %arg6[%c0_37, %c0_38, %68] : memref<1x8x1024xf32, #tpu.memory_space<vmem>>, vector<1x8x128xf32>
    %70 = vector.shape_cast %69 : vector<1x8x128xf32> to vector<8x128xf32>
    %71 = vector.shape_cast %67 : vector<8x128xf32> to vector<1x8x128xf32>
    tpu.vector_store %arg6[%c0_37, %c0_38, %68], %71 {strides = array<i32>} : memref<1x8x1024xf32, #tpu.memory_space<vmem>>, vector<1x8x128xf32>,
    %c4_i32 = arith.constant 4 : i32
    %c8_i32_39 = arith.constant 8 : i32
    %72 = arith.muli %c4_i32, %c8_i32_39 : i32
    %73 = tpu.assume_multiple %72, 8 : i32
    %74 = arith.index_cast %73 : i32 to index
    %c0_40 = arith.constant 0 : index
    %75 = vector.load %arg7[%74, %c0_40] : memref<64x64xf32, #tpu.memory_space<vmem>>, vector<8x64xf32>
    %cst_41 = arith.constant dense<0.000000e+00> : vector<8x64xf32>
    %76 = tpu.matmul %64, %13, %cst_41 {dimension_numbers = #tpu.dot_dimension_numbers<[1], [0], [0], [1], [0, 0, 1, 1], [], []>} : vector<8x64xf32>, vector<64x64xf32>, vector<8x64xf32> -> vector<8x64xf32>
    %77 = arith.addf %75, %76 : vector<8x64xf32>
    %78 = math.tanh %77 : vector<8x64xf32>
    %c128_i32_42 = arith.constant 128 : i32
    %79 = arith.muli %c4_i32, %c128_i32_42 : i32
    %80 = tpu.assume_multiple %79, 128 : i32
    %cst_43 = arith.constant dense<0.000000e+00> : vector<8x128xf32>
    %81 = tpu.matmul %78, %14, %cst_43 {dimension_numbers = #tpu.dot_dimension_numbers<[1], [0], [0], [1], [0, 0, 1, 1], [], []>} : vector<8x64xf32>, vector<64x128xf32>, vector<8x128xf32> -> vector<8x128xf32>
    %c0_44 = arith.constant 0 : index
    %c0_45 = arith.constant 0 : index
    %82 = arith.index_cast %80 : i32 to index
    %83 = vector.load %arg6[%c0_44, %c0_45, %82] : memref<1x8x1024xf32, #tpu.memory_space<vmem>>, vector<1x8x128xf32>
    %84 = vector.shape_cast %83 : vector<1x8x128xf32> to vector<8x128xf32>
    %85 = vector.shape_cast %81 : vector<8x128xf32> to vector<1x8x128xf32>
    tpu.vector_store %arg6[%c0_44, %c0_45, %82], %85 {strides = array<i32>} : memref<1x8x1024xf32, #tpu.memory_space<vmem>>, vector<1x8x128xf32>,
    %c5_i32 = arith.constant 5 : i32
    %c8_i32_46 = arith.constant 8 : i32
    %86 = arith.muli %c5_i32, %c8_i32_46 : i32
    %87 = tpu.assume_multiple %86, 8 : i32
    %88 = arith.index_cast %87 : i32 to index
    %c0_47 = arith.constant 0 : index
    %89 = vector.load %arg7[%88, %c0_47] : memref<64x64xf32, #tpu.memory_space<vmem>>, vector<8x64xf32>
    %cst_48 = arith.constant dense<0.000000e+00> : vector<8x64xf32>
    %90 = tpu.matmul %78, %13, %cst_48 {dimension_numbers = #tpu.dot_dimension_numbers<[1], [0], [0], [1], [0, 0, 1, 1], [], []>} : vector<8x64xf32>, vector<64x64xf32>, vector<8x64xf32> -> vector<8x64xf32>
    %91 = arith.addf %89, %90 : vector<8x64xf32>
    %92 = math.tanh %91 : vector<8x64xf32>
    %c128_i32_49 = arith.constant 128 : i32
    %93 = arith.muli %c5_i32, %c128_i32_49 : i32
    %94 = tpu.assume_multiple %93, 128 : i32
    %cst_50 = arith.constant dense<0.000000e+00> : vector<8x128xf32>
    %95 = tpu.matmul %92, %14, %cst_50 {dimension_numbers = #tpu.dot_dimension_numbers<[1], [0], [0], [1], [0, 0, 1, 1], [], []>} : vector<8x64xf32>, vector<64x128xf32>, vector<8x128xf32> -> vector<8x128xf32>
    %c0_51 = arith.constant 0 : index
    %c0_52 = arith.constant 0 : index
    %96 = arith.index_cast %94 : i32 to index
    %97 = vector.load %arg6[%c0_51, %c0_52, %96] : memref<1x8x1024xf32, #tpu.memory_space<vmem>>, vector<1x8x128xf32>
    %98 = vector.shape_cast %97 : vector<1x8x128xf32> to vector<8x128xf32>
    %99 = vector.shape_cast %95 : vector<8x128xf32> to vector<1x8x128xf32>
    tpu.vector_store %arg6[%c0_51, %c0_52, %96], %99 {strides = array<i32>} : memref<1x8x1024xf32, #tpu.memory_space<vmem>>, vector<1x8x128xf32>,
    %c6_i32 = arith.constant 6 : i32
    %c8_i32_53 = arith.constant 8 : i32
    %100 = arith.muli %c6_i32, %c8_i32_53 : i32
    %101 = tpu.assume_multiple %100, 8 : i32
    %102 = arith.index_cast %101 : i32 to index
    %c0_54 = arith.constant 0 : index
    %103 = vector.load %arg7[%102, %c0_54] : memref<64x64xf32, #tpu.memory_space<vmem>>, vector<8x64xf32>
    %cst_55 = arith.constant dense<0.000000e+00> : vector<8x64xf32>
    %104 = tpu.matmul %92, %13, %cst_55 {dimension_numbers = #tpu.dot_dimension_numbers<[1], [0], [0], [1], [0, 0, 1, 1], [], []>} : vector<8x64xf32>, vector<64x64xf32>, vector<8x64xf32> -> vector<8x64xf32>
    %105 = arith.addf %103, %104 : vector<8x64xf32>
    %106 = math.tanh %105 : vector<8x64xf32>
    %c128_i32_56 = arith.constant 128 : i32
    %107 = arith.muli %c6_i32, %c128_i32_56 : i32
    %108 = tpu.assume_multiple %107, 128 : i32
    %cst_57 = arith.constant dense<0.000000e+00> : vector<8x128xf32>
    %109 = tpu.matmul %106, %14, %cst_57 {dimension_numbers = #tpu.dot_dimension_numbers<[1], [0], [0], [1], [0, 0, 1, 1], [], []>} : vector<8x64xf32>, vector<64x128xf32>, vector<8x128xf32> -> vector<8x128xf32>
    %c0_58 = arith.constant 0 : index
    %c0_59 = arith.constant 0 : index
    %110 = arith.index_cast %108 : i32 to index
    %111 = vector.load %arg6[%c0_58, %c0_59, %110] : memref<1x8x1024xf32, #tpu.memory_space<vmem>>, vector<1x8x128xf32>
    %112 = vector.shape_cast %111 : vector<1x8x128xf32> to vector<8x128xf32>
    %113 = vector.shape_cast %109 : vector<8x128xf32> to vector<1x8x128xf32>
    tpu.vector_store %arg6[%c0_58, %c0_59, %110], %113 {strides = array<i32>} : memref<1x8x1024xf32, #tpu.memory_space<vmem>>, vector<1x8x128xf32>,
    %c7_i32 = arith.constant 7 : i32
    %c8_i32_60 = arith.constant 8 : i32
    %114 = arith.muli %c7_i32, %c8_i32_60 : i32
    %115 = tpu.assume_multiple %114, 8 : i32
    %116 = arith.index_cast %115 : i32 to index
    %c0_61 = arith.constant 0 : index
    %117 = vector.load %arg7[%116, %c0_61] : memref<64x64xf32, #tpu.memory_space<vmem>>, vector<8x64xf32>
    %cst_62 = arith.constant dense<0.000000e+00> : vector<8x64xf32>
    %118 = tpu.matmul %106, %13, %cst_62 {dimension_numbers = #tpu.dot_dimension_numbers<[1], [0], [0], [1], [0, 0, 1, 1], [], []>} : vector<8x64xf32>, vector<64x64xf32>, vector<8x64xf32> -> vector<8x64xf32>
    %119 = arith.addf %117, %118 : vector<8x64xf32>
    %120 = math.tanh %119 : vector<8x64xf32>
    %c128_i32_63 = arith.constant 128 : i32
    %121 = arith.muli %c7_i32, %c128_i32_63 : i32
    %122 = tpu.assume_multiple %121, 128 : i32
    %cst_64 = arith.constant dense<0.000000e+00> : vector<8x128xf32>
    %123 = tpu.matmul %120, %14, %cst_64 {dimension_numbers = #tpu.dot_dimension_numbers<[1], [0], [0], [1], [0, 0, 1, 1], [], []>} : vector<8x64xf32>, vector<64x128xf32>, vector<8x128xf32> -> vector<8x128xf32>
    %c0_65 = arith.constant 0 : index
    %c0_66 = arith.constant 0 : index
    %124 = arith.index_cast %122 : i32 to index
    %125 = vector.load %arg6[%c0_65, %c0_66, %124] : memref<1x8x1024xf32, #tpu.memory_space<vmem>>, vector<1x8x128xf32>
    %126 = vector.shape_cast %125 : vector<1x8x128xf32> to vector<8x128xf32>
    %127 = vector.shape_cast %123 : vector<8x128xf32> to vector<1x8x128xf32>
    tpu.vector_store %arg6[%c0_65, %c0_66, %124], %127 {strides = array<i32>} : memref<1x8x1024xf32, #tpu.memory_space<vmem>>, vector<1x8x128xf32>,
    %c8_i32_67 = arith.constant 8 : i32
    return
  }
  func.func @transform_0(%arg0: i32) -> (i32, i32, i32) {
    %c0_i32 = arith.constant 0 : i32
    %c0_i32_0 = arith.constant 0 : i32
    %c0_i32_1 = arith.constant 0 : i32
    return %arg0, %c0_i32, %c0_i32_0 : i32, i32, i32
  }
  func.func @transform_1(%arg0: i32) -> (i32, i32) {
    %c0_i32 = arith.constant 0 : i32
    %c0_i32_0 = arith.constant 0 : i32
    %c0_i32_1 = arith.constant 0 : i32
    return %c0_i32, %c0_i32_0 : i32, i32
  }
  func.func @transform_2(%arg0: i32) -> (i32, i32) {
    %c0_i32 = arith.constant 0 : i32
    %c0_i32_0 = arith.constant 0 : i32
    %c0_i32_1 = arith.constant 0 : i32
    return %c0_i32, %c0_i32_0 : i32, i32
  }
  func.func @transform_3(%arg0: i32) -> (i32, i32) {
    %c0_i32 = arith.constant 0 : i32
    %c0_i32_0 = arith.constant 0 : i32
    %c0_i32_1 = arith.constant 0 : i32
    return %c0_i32, %c0_i32_0 : i32, i32
  }
  func.func @transform_4(%arg0: i32) -> (i32, i32) {
    %c0_i32 = arith.constant 0 : i32
    %c0_i32_0 = arith.constant 0 : i32
    %c0_i32_1 = arith.constant 0 : i32
    return %c0_i32, %c0_i32_0 : i32, i32
  }
  func.func @transform_5(%arg0: i32) -> (i32, i32, i32) {
    %c0_i32 = arith.constant 0 : i32
    %c0_i32_0 = arith.constant 0 : i32
    %c0_i32_1 = arith.constant 0 : i32
    return %arg0, %c0_i32, %c0_i32_0 : i32, i32, i32
  }
}

</mosaic_0001>

<bundles_post_ra>
// kernel: tpu_custom_call.1
= control target key start
LH: loop header
LB: loop body
LE: loop exit
PB: predicated region body
PF: predicated region fallthrough
CT: control target
= control target key end

     0   :  { %10 = vsyncpa [#allocation4], 0  ;;  %s1467_s0 = inlined_call_operand.vmem [shape: s32[2,64,1], index: 0, kind: input, shape index: {}]   ;;  %s1468_s1 = inlined_call_operand.vmem [shape: f32[128,64], index: 1, kind: input, shape index: {}]   ;;  %s1469_s2 = inlined_call_operand.vmem [shape: f32[64,64], index: 2, kind: input, shape index: {}]   ;;  %s1470_s3 = inlined_call_operand.vmem [shape: f32[1,64], index: 3, kind: input, shape index: {}]   ;;  %s1471_s4 = inlined_call_operand.vmem [shape: f32[64,128], index: 4, kind: input, shape index: {}]   ;;  %s1472_s5 = inlined_call_operand.hbm [shape: f32[2,8,1024], index: 5, kind: output, shape index: {}]  }
   0x1   :  { %12 = vsyncpa [#allocation4 + $0x1], 0  ;;  %s1047_s18 = smov 0   ;;  %s1049_s19 = smov 0  }
   0x2   :  { %s1051_s20 = smov 0   ;;  %s1053_s21 = smov 0  }
   0x3 LB: > { %s1068_s22 = sadd.s32 4294967295, %s1012_s21   ;;  %s836_s23 = sadd.s32 4294967294, %s1012_s21   ;;  %s1012_s21 = sphi %s1053_s21, %s1478_s21   ;;  %s1008_s20 = sphi %s1051_s20, %s1477_s20   ;;  %s1004_s19 = sphi %s1049_s19, %s1476_s19   ;;  %s1000_s18 = sphi %s1047_s18, %s1475_s18  }
   0x4   : > { %s1072_s24 = sadd.s32 1, %s1012_s21   ;;  %s135_s25 = sadd.s32 1, %s1008_s20 }
   0x5   : > { %s132_s26 = ssub.s32 %s1012_s21, %s1072_s24  ;;  %p145_p0 = scmp.ne.s32.totalorder %s1008_s20, %s1004_s19 }
   0x6   : > { %p133_p1 = scmp.eq.s32.totalorder %s132_s26, 0  ;;  %p146_p2 = scmp.eq.s32.totalorder %s1068_s22, 1 }
   0x7   : > { %p151_p3 = scmp.ne.s32.totalorder %s1004_s19, %s1000_s18  ;;  %p152_p4 = scmp.eq.s32.totalorder %s836_s23, 1 }
   0x8   : > { %s1083_s27 = scalar_select %p133_p1, %s1008_s20, %s135_s25  }
   0x9   : > { %p1085_p5 = por %p146_p2, %p145_p0  ;;  %p1089_p6 = por %p152_p4, %p151_p3 }
   0xa   : > { %p839_p7 = scmp.ge.s32.totalorder %s1012_s21, 1  ;;  %p190_p8 = scmp.lt.s32.totalorder %s1012_s21, 3 }
   0xc   : > { %p191_p9 = pnand %p839_p7, %p190_p8 }
   0xd   : > { %p218_p10 = scmp.lt.s32.totalorder (!%p191_p9), %s1068_s22, 1  ;;  %s887_s23 = sshll.u32 (!%p191_p9), %s1068_s22, 6 }
   0xe   : > { %194 = sbr.rel (%p191_p9) target bundleno = 1389 (0x56d), region = 40  ;;  %s772_s30 = scalar_lea.hbm (!%p191_p9), %s1472_s5, %s887_s23 }
   0xf   : > { %s776_s7 = sshll.u32 (!%p191_p9), %s772_s30, 4  ;;  %s777_s7 = int_to_ptr.hbm [resolvable:$true] %s776_s7 }
  0x13   : > { %v296_v0 = vld [vmem:[%s1468_s1 + $0x78] sm:$0xff]  ;;  %v1014_v1 = vmov 0   ;;  %v295_v2 = vld [vmem:[%s1468_s1 + $0x70] sm:$0xff]  ;;  %s219_s9 = scalar_select %p218_p10, %s1068_s22, 1  ;;  %v294_v3 = vld [vmem:[%s1468_s1 + $0x68] sm:$0xff]  ;;  %v1015_v32 = vmov 0.0   ;;  %v231_v33 = vlaneseq }
  0x14   : > { %930 = vset.pattern.permute.xlu0 %v1014_v1  ;;  %931 = vset.pattern.permute.xlu1 %v1014_v1  ;;  %v1109_v4 = vld [vmem:[%s1469_s2 + $0x38] sm:$0xff]  ;;  %v293_v5 = vld [vmem:[%s1468_s1 + $0x60] sm:$0xff]  ;;  %v1126_v8 = vld [vmem:[%s1469_s2 + $0x30] sm:$0xff]  ;;  %v1016_v36 = vmov 1.0   ;;  %vm342_vm7 = vcmask 523264  }
  0x15   : > { %932 = vset.pattern.permute.xlu2 %v1014_v1  ;;  %301 = vmatpush.msra.mxu0 %v296_v0  ;;  %s886_s12 = sshll.u32 %s219_s9, 6  ;;  %v292_v10 = vld [vmem:[%s1468_s1 + $0x58] sm:$0xff]  ;;  %v291_v11 = vld [vmem:[%s1468_s1 + $0x50] sm:$0xff]  ;;  %v290_v12 = vld [vmem:[%s1468_s1 + $0x48] sm:$0xff]  ;;  %v1213_v34 = vand.u32 127, %v231_v33  ;;  %s964_s9 = sshra.s32 %s777_s7, 4  ;;  %s965_s9 = int_to_ptr.hbm [resolvable:$true] %s964_s9 }
  0x16   : > { %s1114_s17 = scalar_lea.vmem %s1467_s0, %s886_s12  ;;  %379 = vmatpush.msra.mxu1 %v1109_v4  ;;  %427 = vmatpush.msra.mxu3 %v1109_v4  ;;  %v289_v16 = vld [vmem:[%s1468_s1 + $0x40] sm:$0xff]  ;;  %v288_v17 = vld [vmem:[%s1468_s1 + $0x38] sm:$0xff]  ;;  %v287_v18 = vld [vmem:[%s1468_s1 + $0x30] sm:$0xff]  ;;  %s966_s10 = scalar_lea.hbm %s965_s9, 64 }
  0x17   : > { %302 = vmatpush.msra.mxu0 %v295_v2  ;;  %v223_v6 = vld [vmem:[%s1114_s17] sm:$0xff]  ;;  %v225_v7 = vld [vmem:[%s1114_s17 + $0x10] sm:$0xff]  ;;  %v224_v13 = vld [vmem:[%s1114_s17 + $0x8] sm:$0xff]  ;;  %p967_p11 = scmp.ne.s32.totalorder %s965_s9, %s966_s10  ;;  %s970_s12 = scalar_lea.hbm %s1472_s5, 128 }
  0x18   : > { %234 = vperm.xlu0 %930, %v223_v6   ;;  %240 = vperm.xlu1 %931, %v225_v7   ;;  %v227_v9 = vld [vmem:[%s1114_s17 + $0x20] sm:$0xff]  ;;  %v226_v14 = vld [vmem:[%s1114_s17 + $0x18] sm:$0xff]  ;;  %v228_v15 = vld [vmem:[%s1114_s17 + $0x28] sm:$0xff]  ;;  %p971_p0 = scmp.lt.s32.totalorder %s965_s9, %s1472_s5  ;;  %p972_p1 = scmp.lt.s32.totalorder %s970_s12, %s966_s10 }
  0x19   : > { %303 = vmatpush.msra.mxu0 %v294_v3  ;;  %246 = vperm.xlu2 %932, %v227_v9   ;;  %v286_v19 = vld [vmem:[%s1468_s1 + $0x28] sm:$0xff]  ;;  %v229_v20 = vld [vmem:[%s1114_s17 + $0x30] sm:$0xff]  ;;  %v285_v21 = vld [vmem:[%s1468_s1 + $0x20] sm:$0xff]  ;;  %p968_p12 = pnand %p967_p11, %p1085_p5 }
  0x1a   : > { %380 = vmatpush.msra.mxu1 %v1126_v8  ;;  %428 = vmatpush.msra.mxu3 %v1126_v8  ;;  %v284_v22 = vld [vmem:[%s1468_s1 + $0x18] sm:$0xff]  ;;  %v283_v23 = vld [vmem:[%s1468_s1 + $0x10] sm:$0xff]  ;;  %v282_v24 = vld [vmem:[%s1468_s1 + $0x8] sm:$0xff]  ;;  %p973_p2 = por %p972_p1, %p971_p0 }
  0x1b   : > { %304 = vmatpush.msra.mxu0 %v293_v5  ;;  %v281_v25 = vld [vmem:[%s1468_s1] sm:$0xff]  ;;  %v1174_v26 = vld [vmem:[%s1469_s2 + $0x28] sm:$0xff]  ;;  %v1185_v28 = vld [vmem:[%s1469_s2 + $0x18] sm:$0xff]  ;;  %p969_p13 = pneg %p968_p12 }
  0x1c   : > { %381 = vmatpush.msra.mxu1 %v1174_v26  ;;  %v1180_v27 = vld [vmem:[%s1469_s2 + $0x20] sm:$0xff]  ;;  %429 = vmatpush.msra.mxu3 %v1174_v26  ;;  %v1192_v29 = vld [vmem:[%s1469_s2 + $0x10] sm:$0xff]  ;;  %v1201_v30 = vld [vmem:[%s1469_s2 + $0x8] sm:$0xff] }
  0x1d   : > { %305 = vmatpush.msra.mxu0 %v292_v10  ;;  %v1208_v31 = vld [vmem:[%s1469_s2] sm:$0xff]  ;;  %v1232_v43 = vld [vmem:[%s1471_s4 + $0x38] sm:$0xff]  ;;  %v1237_v44 = vld [vmem:[%s1471_s4 + $0x30] sm:$0xff]  ;;  %p974_p3 = pnand %p973_p2, %p969_p13 }
  0x1e   : > { %382 = vmatpush.msra.mxu1 %v1180_v27  ;;  %430 = vmatpush.msra.mxu3 %v1180_v27  ;;  %v1250_v45 = vld [vmem:[%s1471_s4 + $0x28] sm:$0xff]  ;;  %v1257_v46 = vld [vmem:[%s1471_s4 + $0x20] sm:$0xff]  ;;  %v1266_v47 = vld [vmem:[%s1471_s4 + $0x18] sm:$0xff] }
  0x1f   : > { %306 = vmatpush.msra.mxu0 %v291_v11  ;;  %404 = vmatpush.msra.mxu2 %v1232_v43  ;;  %v1274_v48 = vld [vmem:[%s1471_s4 + $0x10] sm:$0xff]  ;;  %v1284_v49 = vld [vmem:[%s1471_s4 + $0x8] sm:$0xff]  ;;  %v1293_v50 = vld [vmem:[%s1471_s4] sm:$0xff] }
  0x20   : > { %237 = vperm.xlu0 %930, %v224_v13   ;;  %243 = vperm.xlu1 %931, %v226_v14   ;;  %v1314_v51 = vld [vmem:[%s1470_s3] ss:$0 sm:$0xff]  ;;  %v230_v56 = vld [vmem:[%s1114_s17 + $0x38] sm:$0xff]  ;;  %s215_s17 = sand.u32 1, %s1004_s19  }
  0x21   : > { %307 = vmatpush.msra.mxu0 %v290_v12  ;;  %249 = vperm.xlu2 %932, %v228_v15   ;;  %s840_s15 = sshll.u32 %s215_s17, 6  ;;  %s761_s8 = scalar_lea.sflag [#allocation4], %s215_s17 }
  0x22   : > { %383 = vmatpush.msra.mxu1 %v1185_v28  ;;  %431 = vmatpush.msra.mxu3 %v1185_v28  ;;  %s1360_s16 = scalar_lea.vmem [#allocation3], %s840_s15 }
  0x23   : > { %308 = vmatpush.msra.mxu0 %v289_v16  ;;  %405 = vmatpush.msra.mxu2 %v1237_v44  ;;  %s774_s6 = sshll.u32 %s1360_s16, 4  ;;  %s775_s6 = int_to_ptr.vmem [resolvable:$true] %s774_s6 }
  0x24   : > { %384 = vmatpush.msra.mxu1 %v1192_v29  ;;  %432 = vmatpush.msra.mxu3 %v1192_v29 }
  0x25   : > { %309 = vmatpush.msra.mxu0 %v288_v17  ;;  %406 = vmatpush.msra.mxu2 %v1250_v45 }
  0x26   : > { %385 = vmatpush.msra.mxu1 %v1201_v30  ;;  %433 = vmatpush.msra.mxu3 %v1201_v30 }
  0x27   : > { %310 = vmatpush.msra.mxu0 %v287_v18  ;;  %407 = vmatpush.msra.mxu2 %v1257_v46 }
  0x28   : > { %252 = vperm.xlu0 %930, %v229_v20   ;;  %386 = vmatpush.msra.mxu1 %v1208_v31 }
  0x29   : > { %311 = vmatpush.msra.mxu0 %v286_v19  ;;  %387 = vmatmul.f32.vlgmr.msra.gmra.mxu1 %v1015_v32 }
  0x2a   : > { %434 = vmatpush.msra.mxu3 %v1208_v31  ;;  %452 = vmatpush.msrb.mxu1 %v1232_v43 }
  0x2b   : > { %312 = vmatpush.msra.mxu0 %v285_v21  ;;  %408 = vmatpush.msra.mxu2 %v1266_v47 }
  0x2c   : > { %501 = vmatpush.msrb.mxu3 %v1232_v43  ;;  %453 = vmatpush.msrb.mxu1 %v1237_v44 }
  0x2d   : > { %313 = vmatpush.msra.mxu0 %v284_v22  ;;  %409 = vmatpush.msra.mxu2 %v1274_v48 }
  0x2e   : > { %502 = vmatpush.msrb.mxu3 %v1237_v44  ;;  %454 = vmatpush.msrb.mxu1 %v1250_v45 }
  0x2f   : > { %314 = vmatpush.msra.mxu0 %v283_v23  ;;  %410 = vmatpush.msra.mxu2 %v1284_v49 }
  0x30   : > { %503 = vmatpush.msrb.mxu3 %v1250_v45  ;;  %455 = vmatpush.msrb.mxu1 %v1257_v46 }
  0x31   : > { %315 = vmatpush.msra.mxu0 %v282_v24  ;;  %411 = vmatpush.msra.mxu2 %v1293_v50 }
  0x32   : > { %504 = vmatpush.msrb.mxu3 %v1257_v46  ;;  %456 = vmatpush.msrb.mxu1 %v1266_v47 }
  0x33   : > { %316 = vmatpush.msra.mxu0 %v281_v25  ;;  %476 = vmatpush.msrb.mxu2 %v1109_v4 }
  0x34   : > { %505 = vmatpush.msrb.mxu3 %v1266_v47  ;;  %457 = vmatpush.msrb.mxu1 %v1274_v48 }
  0x35   : > { %746 = vmatpush.msrb.mxu0 %v1232_v43  ;;  %477 = vmatpush.msrb.mxu2 %v1126_v8 }
  0x36   : > { %506 = vmatpush.msrb.mxu3 %v1274_v48  ;;  %458 = vmatpush.msrb.mxu1 %v1284_v49 }
  0x37   : > { %747 = vmatpush.msrb.mxu0 %v1237_v44  ;;  %478 = vmatpush.msrb.mxu2 %v1174_v26 }
  0x38   : > { %507 = vmatpush.msrb.mxu3 %v1284_v49  ;;  %459 = vmatpush.msrb.mxu1 %v1293_v50 }
  0x39   : > { %748 = vmatpush.msrb.mxu0 %v1250_v45  ;;  %479 = vmatpush.msrb.mxu2 %v1180_v27 }
  0x3a   : > { %525 = vmatpush.msra.mxu1 %v1109_v4  ;;  %508 = vmatpush.msrb.mxu3 %v1293_v50 }
  0x3b   : > { %749 = vmatpush.msrb.mxu0 %v1257_v46  ;;  %480 = vmatpush.msrb.mxu2 %v1185_v28 }
  0x3c   : > { %526 = vmatpush.msra.mxu1 %v1126_v8  ;;  %255 = vperm.xlu1 %931, %v230_v56  }
  0x3d   : > { %750 = vmatpush.msrb.mxu0 %v1266_v47  ;;  %481 = vmatpush.msrb.mxu2 %v1192_v29 }
  0x3e   : > { %527 = vmatpush.msra.mxu1 %v1174_v26 }
  0x3f   : > { %751 = vmatpush.msrb.mxu0 %v1274_v48  ;;  %482 = vmatpush.msrb.mxu2 %v1201_v30 }
  0x40   : > { %528 = vmatpush.msra.mxu1 %v1180_v27 }
  0x41   : > { %752 = vmatpush.msrb.mxu0 %v1284_v49  ;;  %483 = vmatpush.msrb.mxu2 %v1208_v31 }
  0x42   : > { %529 = vmatpush.msra.mxu1 %v1185_v28 }
  0x43   : > { %753 = vmatpush.msrb.mxu0 %v1293_v50 }
  0x44   : > { %530 = vmatpush.msra.mxu1 %v1192_v29 }
  0x46   : > { %531 = vmatpush.msra.mxu1 %v1201_v30 }
  0x48   : > { %532 = vmatpush.msra.mxu1 %v1208_v31 }
  0x73   : > { %v247_v40 = vpop.permute.xlu2 %246 }
  0x74   : > { %vm261_vm4 = vcmp.eq.s32.totalorder %v1213_v34, %v247_v40 }
  0x7b   : > { %v250_v41 = vpop.permute.xlu2 %249 }
  0x7c   : > { %vm262_vm5 = vcmp.eq.s32.totalorder %v1213_v34, %v250_v41 }
  0x8a   : > { %v235_v35 = vpop.permute.xlu0 %234  ;;  %v241_v38 = vpop.permute.xlu1 %240 }
  0x8b   : > { %vm257_vm0 = vcmp.eq.s32.totalorder %v1213_v34, %v235_v35  ;;  %vm259_vm2 = vcmp.eq.s32.totalorder %v1213_v34, %v241_v38 }
  0x8c   : > { %851 = vmatmul.msk.f32.vlgmr.msra.gmra.mxu0 %vm257_vm0, %v1016_v36 }
  0x92   : > { %v238_v37 = vpop.permute.xlu0 %237  ;;  %v244_v39 = vpop.permute.xlu1 %243 }
  0x93   : > { %vm258_vm1 = vcmp.eq.s32.totalorder %v1213_v34, %v238_v37  ;;  %vm260_vm3 = vcmp.eq.s32.totalorder %v1213_v34, %v244_v39 }
  0x94   : > { %852 = vmatmul.msk.f32.gmra.mxu0 %vm258_vm1, %v1016_v36 }
  0x9a   : > { %v253_v42 = vpop.permute.xlu0 %252 }
  0x9b   : > { %vm263_vm6 = vcmp.eq.s32.totalorder %v1213_v34, %v253_v42 }
  0x9c   : > { %853 = vmatmul.msk.f32.gmra.mxu0 %vm259_vm2, %v1016_v36 }
  0xa4   : > { %854 = vmatmul.msk.f32.gmra.mxu0 %vm260_vm3, %v1016_v36 }
  0xa6   : > { %v388_v55 = vpop.f32.mrf.mxu1 }
  0xac   : > { %855 = vmatmul.msk.f32.gmra.mxu0 %vm261_vm4, %v1016_v36 }
  0xae   : > { %v256_v9 = vpop.permute.xlu1 %255 }
  0xaf   : > { %vm264_vm8 = vcmp.eq.s32.totalorder %v1213_v34, %v256_v9 }
  0xb4   : > { %856 = vmatmul.msk.f32.gmra.mxu0 %vm262_vm5, %v1016_v36 }
  0xbc   : > { %857 = vmatmul.msk.f32.gmra.mxu0 %vm263_vm6, %v1016_v36 }
  0xc4   : > { %858 = vmatmul.msk.f32.gmra.mxu0 %vm264_vm8, %v1016_v36 }
 0x109   : > { %v318_v52 = vpop.f32.mrf.mxu0 }
 0x10a   : > { %v319_v53 = vadd.f32 %v1314_v51, %v318_v52 }
 0x10c   : > { %343 = vst.msk [vmem:[#allocation2] sm:$0xff] %vm342_vm7, %v319_v53 }
 0x111   : > { %v321_v54 = vpop.f32.mrf.mxu0 }
 0x112   : > { %v322_v57 = vadd.f32 %v1314_v51, %v321_v54 }
 0x113   : > { %v367_v58 = vld [vmem:[#allocation2] sm:$0xff] }
 0x114   : > { %344 = vst.msk [vmem:[#allocation2 + $0x8] sm:$0xff] %vm342_vm7, %v322_v57  ;;  %v391_v59 = vadd.f32 %v388_v55, %v367_v58 }
 0x116   : > { %934 = vtanh.f32 %v391_v59 }
 0x119   : > { %v324_v60 = vpop.f32.mrf.mxu0 }
 0x11a   : > { %v325_v61 = vadd.f32 %v1314_v51, %v324_v60 }
 0x11b   : > { %v418_v11 = vld [vmem:[#allocation2 + $0x8] sm:$0xff] }
 0x11c   : > { %v935_v62 = vpop.eup %934  ;;  %345 = vst.msk [vmem:[#allocation2 + $0x10] sm:$0xff] %vm342_vm7, %v325_v61 }
 0x11d   : > { %859 = vmatmul.msk.f32.vlgmr.msra.gmra.mxu2 %vm342_vm7, %v935_v62  ;;  %860 = vmatmul.msk.f32.vlgmr.msra.gmra.mxu3 %vm342_vm7, %v935_v62 }
 0x11e   : > { %550 = vmatpush.msra.mxu2 %v1232_v43  ;;  %574 = vmatpush.msra.mxu3 %v1109_v4 }
 0x120   : > { %551 = vmatpush.msra.mxu2 %v1237_v44  ;;  %575 = vmatpush.msra.mxu3 %v1126_v8 }
 0x121   : > { %v327_v63 = vpop.f32.mrf.mxu0 }
 0x122   : > { %v328_v0 = vadd.f32 %v1314_v51, %v327_v63  ;;  %552 = vmatpush.msra.mxu2 %v1250_v45  ;;  %576 = vmatpush.msra.mxu3 %v1174_v26 }
 0x123   : > { %v467_v18 = vld [vmem:[#allocation2 + $0x10] sm:$0xff] }
 0x124   : > { %346 = vst.msk [vmem:[#allocation2 + $0x18] sm:$0xff] %vm342_vm7, %v328_v0  ;;  %553 = vmatpush.msra.mxu2 %v1257_v46  ;;  %577 = vmatpush.msra.mxu3 %v1180_v27 }
 0x126   : > { %554 = vmatpush.msra.mxu2 %v1266_v47  ;;  %578 = vmatpush.msra.mxu3 %v1185_v28 }
 0x128   : > { %555 = vmatpush.msra.mxu2 %v1274_v48  ;;  %579 = vmatpush.msra.mxu3 %v1192_v29 }
 0x129   : > { %v330_v1 = vpop.f32.mrf.mxu0 }
 0x12a   : > { %v331_v2 = vadd.f32 %v1314_v51, %v330_v1  ;;  %556 = vmatpush.msra.mxu2 %v1284_v49  ;;  %580 = vmatpush.msra.mxu3 %v1201_v30 }
 0x12b   : > { %v516_v22 = vld [vmem:[#allocation2 + $0x18] sm:$0xff] }
 0x12c   : > { %347 = vst.msk [vmem:[#allocation2 + $0x20] sm:$0xff] %vm342_vm7, %v331_v2  ;;  %557 = vmatpush.msra.mxu2 %v1293_v50  ;;  %581 = vmatpush.msra.mxu3 %v1208_v31 }
 0x131   : > { %v333_v3 = vpop.f32.mrf.mxu0 }
 0x132   : > { %v334_v5 = vadd.f32 %v1314_v51, %v333_v3 }
 0x134   : > { %348 = vst.msk [vmem:[#allocation2 + $0x28] sm:$0xff] %vm342_vm7, %v334_v5 }
 0x139   : > { %v336_v6 = vpop.f32.mrf.mxu0 }
 0x13a   : > { %v337_v7 = vadd.f32 %v1314_v51, %v336_v6 }
 0x13b   : > { %v614_v33 = vld [vmem:[#allocation2 + $0x28] sm:$0xff] }
 0x13c   : > { %349 = vst.msk [vmem:[#allocation2 + $0x30] sm:$0xff] %vm342_vm7, %v337_v7 }
 0x141   : > { %v339_v15 = vpop.f32.mrf.mxu0 }
 0x142   : > { %v340_v16 = vadd.f32 %v1314_v51, %v339_v15 }
 0x143   : > { %v663_v35 = vld [vmem:[#allocation2 + $0x30] sm:$0xff] }
 0x144   : > { %350 = vst.msk [vmem:[#allocation2 + $0x38] sm:$0xff] %vm342_vm7, %v340_v16 }
 0x14b   : > { %v712_v41 = vld [vmem:[#allocation2 + $0x38] sm:$0xff] }
 0x1a0   : > { %v413_v10 = vpop.f32.mrf.mxu2  ;;  %v436_v12 = vpop.f32.mrf.mxu3 }
 0x1a1   : > { %416 = vst [vmem:[%s1360_s16] sm:$0xff] %v413_v10  ;;  %v439_v13 = vadd.f32 %v436_v12, %v418_v11 }
 0x1a3   : > { %936 = vtanh.f32 %v439_v13 }
 0x1a9   : > { %v937_v14 = vpop.eup %936 }
 0x1aa   : > { %861 = vmatmul.msk.f32.vlgmr.msrb.gmra.mxu1 %vm342_vm7, %v937_v14  ;;  %863 = vmatmul.msk.f32.vlgmr.msrb.gmra.mxu2 %vm342_vm7, %v937_v14 }
 0x1ab   : > { %599 = vmatpush.msrb.mxu1 %v1232_v43  ;;  %623 = vmatpush.msrb.mxu2 %v1109_v4 }
 0x1ad   : > { %600 = vmatpush.msrb.mxu1 %v1237_v44  ;;  %624 = vmatpush.msrb.mxu2 %v1126_v8 }
 0x1af   : > { %601 = vmatpush.msrb.mxu1 %v1250_v45  ;;  %625 = vmatpush.msrb.mxu2 %v1174_v26 }
 0x1b1   : > { %602 = vmatpush.msrb.mxu1 %v1257_v46  ;;  %626 = vmatpush.msrb.mxu2 %v1180_v27 }
 0x1b3   : > { %603 = vmatpush.msrb.mxu1 %v1266_v47  ;;  %627 = vmatpush.msrb.mxu2 %v1185_v28 }
 0x1b5   : > { %604 = vmatpush.msrb.mxu1 %v1274_v48  ;;  %628 = vmatpush.msrb.mxu2 %v1192_v29 }
 0x1b7   : > { %605 = vmatpush.msrb.mxu1 %v1284_v49  ;;  %629 = vmatpush.msrb.mxu2 %v1201_v30 }
 0x1b9   : > { %606 = vmatpush.msrb.mxu1 %v1293_v50  ;;  %630 = vmatpush.msrb.mxu2 %v1208_v31 }
 0x227   : > { %v461_v17 = vpop.f32.mrf.mxu1 }
 0x228   : > { %862 = vst [vmem:[%s1360_s16 + $0x8] sm:$0xff] %v461_v17 }
 0x22d   : > { %v485_v19 = vpop.f32.mrf.mxu2 }
 0x22e   : > { %v488_v20 = vadd.f32 %v485_v19, %v467_v18 }
 0x230   : > { %938 = vtanh.f32 %v488_v20 }
 0x236   : > { %v939_v21 = vpop.eup %938 }
 0x237   : > { %864 = vmatmul.msk.f32.vlgmr.msrb.gmra.mxu3 %vm342_vm7, %v939_v21  ;;  %866 = vmatmul.msk.f32.vlgmr.msra.gmra.mxu1 %vm342_vm7, %v939_v21 }
 0x238   : > { %648 = vmatpush.msrb.mxu3 %v1232_v43  ;;  %672 = vmatpush.msra.mxu1 %v1109_v4 }
 0x23a   : > { %649 = vmatpush.msrb.mxu3 %v1237_v44  ;;  %673 = vmatpush.msra.mxu1 %v1126_v8 }
 0x23c   : > { %650 = vmatpush.msrb.mxu3 %v1250_v45  ;;  %674 = vmatpush.msra.mxu1 %v1174_v26 }
 0x23e   : > { %651 = vmatpush.msrb.mxu3 %v1257_v46  ;;  %675 = vmatpush.msra.mxu1 %v1180_v27 }
 0x240   : > { %652 = vmatpush.msrb.mxu3 %v1266_v47  ;;  %676 = vmatpush.msra.mxu1 %v1185_v28 }
 0x242   : > { %653 = vmatpush.msrb.mxu3 %v1274_v48  ;;  %677 = vmatpush.msra.mxu1 %v1192_v29 }
 0x244   : > { %654 = vmatpush.msrb.mxu3 %v1284_v49  ;;  %678 = vmatpush.msra.mxu1 %v1201_v30 }
 0x246   : > { %655 = vmatpush.msrb.mxu3 %v1293_v50  ;;  %679 = vmatpush.msra.mxu1 %v1208_v31 }
 0x2b4   : > { %v534_v23 = vpop.f32.mrf.mxu1 }
 0x2b5   : > { %v537_v24 = vadd.f32 %v534_v23, %v516_v22 }
 0x2b7   : > { %940 = vtanh.f32 %v537_v24 }
 0x2ba   : > { %v510_v25 = vpop.f32.mrf.mxu3 }
 0x2bb   : > { %865 = vst [vmem:[%s1360_s16 + $0x10] sm:$0xff] %v510_v25 }
 0x2bd   : > { %v941_v32 = vpop.eup %940 }
 0x2be   : > { %867 = vmatmul.msk.f32.vlgmr.msra.gmra.mxu2 %vm342_vm7, %v941_v32  ;;  %869 = vmatmul.msk.f32.vlgmr.msra.gmra.mxu3 %vm342_vm7, %v941_v32 }
 0x2bf   : > { %697 = vmatpush.msra.mxu2 %v1232_v43  ;;  %721 = vmatpush.msra.mxu3 %v1109_v4  ;;  %v565_v4 = vld [vmem:[#allocation2 + $0x20] sm:$0xff] }
 0x2c1   : > { %698 = vmatpush.msra.mxu2 %v1237_v44  ;;  %722 = vmatpush.msra.mxu3 %v1126_v8 }
 0x2c3   : > { %699 = vmatpush.msra.mxu2 %v1250_v45  ;;  %723 = vmatpush.msra.mxu3 %v1174_v26 }
 0x2c5   : > { %700 = vmatpush.msra.mxu2 %v1257_v46  ;;  %724 = vmatpush.msra.mxu3 %v1180_v27 }
 0x2c7   : > { %701 = vmatpush.msra.mxu2 %v1266_v47  ;;  %725 = vmatpush.msra.mxu3 %v1185_v28 }
 0x2c9   : > { %702 = vmatpush.msra.mxu2 %v1274_v48  ;;  %726 = vmatpush.msra.mxu3 %v1192_v29 }
 0x2cb   : > { %703 = vmatpush.msra.mxu2 %v1284_v49  ;;  %727 = vmatpush.msra.mxu3 %v1201_v30 }
 0x2cd   : > { %704 = vmatpush.msra.mxu2 %v1293_v50  ;;  %728 = vmatpush.msra.mxu3 %v1208_v31 }
 0x341   : > { %v559_v8 = vpop.f32.mrf.mxu2  ;;  %v583_v26 = vpop.f32.mrf.mxu3 }
 0x342   : > { %868 = vst [vmem:[%s1360_s16 + $0x18] sm:$0xff] %v559_v8  ;;  %v586_v27 = vadd.f32 %v583_v26, %v565_v4 }
 0x344   : > { %942 = vtanh.f32 %v586_v27 }
 0x34a   : > { %v943_v28 = vpop.eup %942 }
 0x34b   : > { %870 = vmatmul.msk.f32.vlgmr.msrb.gmra.mxu1 %vm342_vm7, %v943_v28  ;;  %872 = vmatmul.msk.f32.vlgmr.msrb.gmra.mxu2 %vm342_vm7, %v943_v28 }
 0x3c8   : > { %v608_v29 = vpop.f32.mrf.mxu1 }
 0x3c9   : > { %871 = vst [vmem:[%s1360_s16 + $0x20] sm:$0xff] %v608_v29 }
 0x3ce   : > { %v632_v30 = vpop.f32.mrf.mxu2 }
 0x3cf   : > { %v635_v34 = vadd.f32 %v632_v30, %v614_v33 }
 0x3d1   : > { %944 = vtanh.f32 %v635_v34 }
 0x3d7   : > { %v945_v31 = vpop.eup %944 }
 0x3d8   : > { %873 = vmatmul.msk.f32.vlgmr.msrb.gmra.mxu3 %vm342_vm7, %v945_v31  ;;  %875 = vmatmul.msk.f32.vlgmr.msra.gmra.mxu1 %vm342_vm7, %v945_v31 }
 0x455   : > { %v681_v36 = vpop.f32.mrf.mxu1 }
 0x456   : > { %v684_v37 = vadd.f32 %v681_v36, %v663_v35 }
 0x458   : > { %946 = vtanh.f32 %v684_v37 }
 0x45b   : > { %v657_v38 = vpop.f32.mrf.mxu3 }
 0x45c   : > { %874 = vst [vmem:[%s1360_s16 + $0x28] sm:$0xff] %v657_v38 }
 0x45e   : > { %v947_v39 = vpop.eup %946 }
 0x45f   : > { %876 = vmatmul.msk.f32.vlgmr.msra.gmra.mxu2 %vm342_vm7, %v947_v39  ;;  %878 = vmatmul.msk.f32.vlgmr.msra.gmra.mxu3 %vm342_vm7, %v947_v39 }
 0x4e2   : > { %v706_v40 = vpop.f32.mrf.mxu2  ;;  %v730_v42 = vpop.f32.mrf.mxu3 }
 0x4e3   : > { %877 = vst [vmem:[%s1360_s16 + $0x30] sm:$0xff] %v706_v40  ;;  %v733_v43 = vadd.f32 %v730_v42, %v712_v41 }
 0x4e5   : > { %948 = vtanh.f32 %v733_v43 }
 0x4eb   : > { %v949_v44 = vpop.eup %948 }
 0x4ec   : > { %879 = vmatmul.msk.f32.vlgmr.msrb.gmra.mxu0 %vm342_vm7, %v949_v44 }
 0x569   : > { %v755_v45 = vpop.f32.mrf.mxu0 }
 0x56a   : > { %880 = vst [vmem:[%s1360_s16 + $0x38] sm:$0xff] %v755_v45 }
 0x56b   : > { %977 = shalt.err (!%p974_p3)
}
 0x56c   : > { %888 = dma.vmem_to_hbm [thread:$0]  (%p1085_p5), %s775_s6, 1024, %s777_s7, %s761_s8  }
 0x56d PF: > { %p894_p4 = scmp.ge.s32.totalorder %s1012_s21, 2  ;;  %s788_s17 = sand.u32 1, %s1000_s18  }
 0x56e   : > { %s789_s15 = scalar_lea.sflag [#allocation4], %s788_s17 }
 0x56f   : > { %p891_p7 = pnand %p894_p4, %p1089_p6 }
 0x571   : > { %p892_p8 = pneg %p891_p7 }
 0x573   : > { %995 = dma.done.wait (%p892_p8), %s789_s15, 1024  }
 0x574   : > { %997 = vsyncadd (%p892_p8), %s789_s15, 4294966272  ;;  %p15_p9 = scmp.ge.s32.totalorder %s1072_s24, 4   ;;  %s1475_s18 = smov %s1004_s19 }
 0x575   : > { %s1476_s19 = smov %s1008_s20  ;;  %s1477_s20 = smov %s1083_s27 }
 0x576   : > { %s1478_s21 = smov %s1072_s24  ;;  %17 = sbr.rel (!%p15_p9) target bundleno = 3 (0x3), region = 89 }
 0x57b   :  { %795 = vsyncpa [#allocation4], 1 }
 0x57c   :  { %797 = vsyncpa [#allocation4 + $0x1], 1 }

// kernel: tpu_custom_call.1
= control target key start
LH: loop header
LB: loop body
LE: loop exit
PB: predicated region body
PF: predicated region fallthrough
CT: control target
= control target key end

     0   :  { %10 = vsyncpa [#allocation4], 0  ;;  %s1467_s0 = inlined_call_operand.vmem [shape: s32[2,64,1], index: 0, kind: input, shape index: {}]   ;;  %s1468_s1 = inlined_call_operand.vmem [shape: f32[128,64], index: 1, kind: input, shape index: {}]   ;;  %s1469_s2 = inlined_call_operand.vmem [shape: f32[64,64], index: 2, kind: input, shape index: {}]   ;;  %s1470_s3 = inlined_call_operand.vmem [shape: f32[1,64], index: 3, kind: input, shape index: {}]   ;;  %s1471_s4 = inlined_call_operand.vmem [shape: f32[64,128], index: 4, kind: input, shape index: {}]   ;;  %s1472_s5 = inlined_call_operand.hbm [shape: f32[2,8,1024], index: 5, kind: output, shape index: {}]  }
   0x1   :  { %12 = vsyncpa [#allocation4 + $0x1], 0  ;;  %s1047_s18 = smov 0   ;;  %s1049_s19 = smov 0  }
   0x2   :  { %s1051_s20 = smov 0   ;;  %s1053_s21 = smov 0  }
   0x3 LB: > { %s1068_s22 = sadd.s32 4294967295, %s1012_s21   ;;  %s836_s23 = sadd.s32 4294967294, %s1012_s21   ;;  %s1012_s21 = sphi %s1053_s21, %s1478_s21   ;;  %s1008_s20 = sphi %s1051_s20, %s1477_s20   ;;  %s1004_s19 = sphi %s1049_s19, %s1476_s19   ;;  %s1000_s18 = sphi %s1047_s18, %s1475_s18  }
   0x4   : > { %s1072_s24 = sadd.s32 1, %s1012_s21   ;;  %s135_s25 = sadd.s32 1, %s1008_s20 }
   0x5   : > { %s132_s26 = ssub.s32 %s1012_s21, %s1072_s24  ;;  %p145_p0 = scmp.ne.s32.totalorder %s1008_s20, %s1004_s19 }
   0x6   : > { %p133_p1 = scmp.eq.s32.totalorder %s132_s26, 0  ;;  %p146_p2 = scmp.eq.s32.totalorder %s1068_s22, 1 }
   0x7   : > { %p151_p3 = scmp.ne.s32.totalorder %s1004_s19, %s1000_s18  ;;  %p152_p4 = scmp.eq.s32.totalorder %s836_s23, 1 }
   0x8   : > { %s1083_s27 = scalar_select %p133_p1, %s1008_s20, %s135_s25  }
   0x9   : > { %p1085_p5 = por %p146_p2, %p145_p0  ;;  %p1089_p6 = por %p152_p4, %p151_p3 }
   0xa   : > { %p839_p7 = scmp.ge.s32.totalorder %s1012_s21, 1  ;;  %p190_p8 = scmp.lt.s32.totalorder %s1012_s21, 3 }
   0xc   : > { %p191_p9 = pnand %p839_p7, %p190_p8 }
   0xd   : > { %p218_p10 = scmp.lt.s32.totalorder (!%p191_p9), %s1068_s22, 1  ;;  %s887_s23 = sshll.u32 (!%p191_p9), %s1068_s22, 6 }
   0xe   : > { %194 = sbr.rel (%p191_p9) target bundleno = 1389 (0x56d), region = 40  ;;  %s772_s30 = scalar_lea.hbm (!%p191_p9), %s1472_s5, %s887_s23 }
   0xf   : > { %s776_s7 = sshll.u32 (!%p191_p9), %s772_s30, 4  ;;  %s777_s7 = int_to_ptr.hbm [resolvable:$true] %s776_s7 }
  0x13   : > { %v296_v0 = vld [vmem:[%s1468_s1 + $0x78] sm:$0xff]  ;;  %v1014_v1 = vmov 0   ;;  %v295_v2 = vld [vmem:[%s1468_s1 + $0x70] sm:$0xff]  ;;  %s219_s9 = scalar_select %p218_p10, %s1068_s22, 1  ;;  %v294_v3 = vld [vmem:[%s1468_s1 + $0x68] sm:$0xff]  ;;  %v1015_v32 = vmov 0.0   ;;  %v231_v33 = vlaneseq }
  0x14   : > { %930 = vset.pattern.permute.xlu0 %v1014_v1  ;;  %931 = vset.pattern.permute.xlu1 %v1014_v1  ;;  %v1109_v4 = vld [vmem:[%s1469_s2 + $0x38] sm:$0xff]  ;;  %v293_v5 = vld [vmem:[%s1468_s1 + $0x60] sm:$0xff]  ;;  %v1126_v8 = vld [vmem:[%s1469_s2 + $0x30] sm:$0xff]  ;;  %v1016_v36 = vmov 1.0   ;;  %vm342_vm7 = vcmask 523264  }
  0x15   : > { %932 = vset.pattern.permute.xlu2 %v1014_v1  ;;  %301 = vmatpush.msra.mxu0 %v296_v0  ;;  %s886_s12 = sshll.u32 %s219_s9, 6  ;;  %v292_v10 = vld [vmem:[%s1468_s1 + $0x58] sm:$0xff]  ;;  %v291_v11 = vld [vmem:[%s1468_s1 + $0x50] sm:$0xff]  ;;  %v290_v12 = vld [vmem:[%s1468_s1 + $0x48] sm:$0xff]  ;;  %v1213_v34 = vand.u32 127, %v231_v33  ;;  %s964_s9 = sshra.s32 %s777_s7, 4  ;;  %s965_s9 = int_to_ptr.hbm [resolvable:$true] %s964_s9 }
  0x16   : > { %s1114_s17 = scalar_lea.vmem %s1467_s0, %s886_s12  ;;  %379 = vmatpush.msra.mxu1 %v1109_v4  ;;  %427 = vmatpush.msra.mxu3 %v1109_v4  ;;  %v289_v16 = vld [vmem:[%s1468_s1 + $0x40] sm:$0xff]  ;;  %v288_v17 = vld [vmem:[%s1468_s1 + $0x38] sm:$0xff]  ;;  %v287_v18 = vld [vmem:[%s1468_s1 + $0x30] sm:$0xff]  ;;  %s966_s10 = scalar_lea.hbm %s965_s9, 64 }
  0x17   : > { %302 = vmatpush.msra.mxu0 %v295_v2  ;;  %v223_v6 = vld [vmem:[%s1114_s17] sm:$0xff]  ;;  %v225_v7 = vld [vmem:[%s1114_s17 + $0x10] sm:$0xff]  ;;  %v224_v13 = vld [vmem:[%s1114_s17 + $0x8] sm:$0xff]  ;;  %p967_p11 = scmp.ne.s32.totalorder %s965_s9, %s966_s10  ;;  %s970_s12 = scalar_lea.hbm %s1472_s5, 128 }
  0x18   : > { %234 = vperm.xlu0 %930, %v223_v6   ;;  %240 = vperm.xlu1 %931, %v225_v7   ;;  %v227_v9 = vld [vmem:[%s1114_s17 + $0x20] sm:$0xff]  ;;  %v226_v14 = vld [vmem:[%s1114_s17 + $0x18] sm:$0xff]  ;;  %v228_v15 = vld [vmem:[%s1114_s17 + $0x28] sm:$0xff]  ;;  %p971_p0 = scmp.lt.s32.totalorder %s965_s9, %s1472_s5  ;;  %p972_p1 = scmp.lt.s32.totalorder %s970_s12, %s966_s10 }
  0x19   : > { %303 = vmatpush.msra.mxu0 %v294_v3  ;;  %246 = vperm.xlu2 %932, %v227_v9   ;;  %v286_v19 = vld [vmem:[%s1468_s1 + $0x28] sm:$0xff]  ;;  %v229_v20 = vld [vmem:[%s1114_s17 + $0x30] sm:$0xff]  ;;  %v285_v21 = vld [vmem:[%s1468_s1 + $0x20] sm:$0xff]  ;;  %p968_p12 = pnand %p967_p11, %p1085_p5 }
  0x1a   : > { %380 = vmatpush.msra.mxu1 %v1126_v8  ;;  %428 = vmatpush.msra.mxu3 %v1126_v8  ;;  %v284_v22 = vld [vmem:[%s1468_s1 + $0x18] sm:$0xff]  ;;  %v283_v23 = vld [vmem:[%s1468_s1 + $0x10] sm:$0xff]  ;;  %v282_v24 = vld [vmem:[%s1468_s1 + $0x8] sm:$0xff]  ;;  %p973_p2 = por %p972_p1, %p971_p0 }
  0x1b   : > { %304 = vmatpush.msra.mxu0 %v293_v5  ;;  %v281_v25 = vld [vmem:[%s1468_s1] sm:$0xff]  ;;  %v1174_v26 = vld [vmem:[%s1469_s2 + $0x28] sm:$0xff]  ;;  %v1185_v28 = vld [vmem:[%s1469_s2 + $0x18] sm:$0xff]  ;;  %p969_p13 = pneg %p968_p12 }
  0x1c   : > { %381 = vmatpush.msra.mxu1 %v1174_v26  ;;  %v1180_v27 = vld [vmem:[%s1469_s2 + $0x20] sm:$0xff]  ;;  %429 = vmatpush.msra.mxu3 %v1174_v26  ;;  %v1192_v29 = vld [vmem:[%s1469_s2 + $0x10] sm:$0xff]  ;;  %v1201_v30 = vld [vmem:[%s1469_s2 + $0x8] sm:$0xff] }
  0x1d   : > { %305 = vmatpush.msra.mxu0 %v292_v10  ;;  %v1208_v31 = vld [vmem:[%s1469_s2] sm:$0xff]  ;;  %v1232_v43 = vld [vmem:[%s1471_s4 + $0x38] sm:$0xff]  ;;  %v1237_v44 = vld [vmem:[%s1471_s4 + $0x30] sm:$0xff]  ;;  %p974_p3 = pnand %p973_p2, %p969_p13 }
  0x1e   : > { %382 = vmatpush.msra.mxu1 %v1180_v27  ;;  %430 = vmatpush.msra.mxu3 %v1180_v27  ;;  %v1250_v45 = vld [vmem:[%s1471_s4 + $0x28] sm:$0xff]  ;;  %v1257_v46 = vld [vmem:[%s1471_s4 + $0x20] sm:$0xff]  ;;  %v1266_v47 = vld [vmem:[%s1471_s4 + $0x18] sm:$0xff] }
  0x1f   : > { %306 = vmatpush.msra.mxu0 %v291_v11  ;;  %404 = vmatpush.msra.mxu2 %v1232_v43  ;;  %v1274_v48 = vld [vmem:[%s1471_s4 + $0x10] sm:$0xff]  ;;  %v1284_v49 = vld [vmem:[%s1471_s4 + $0x8] sm:$0xff]  ;;  %v1293_v50 = vld [vmem:[%s1471_s4] sm:$0xff] }
  0x20   : > { %237 = vperm.xlu0 %930, %v224_v13   ;;  %243 = vperm.xlu1 %931, %v226_v14   ;;  %v1314_v51 = vld [vmem:[%s1470_s3] ss:$0 sm:$0xff]  ;;  %v230_v56 = vld [vmem:[%s1114_s17 + $0x38] sm:$0xff]  ;;  %s215_s17 = sand.u32 1, %s1004_s19  }
  0x21   : > { %307 = vmatpush.msra.mxu0 %v290_v12  ;;  %249 = vperm.xlu2 %932, %v228_v15   ;;  %s840_s15 = sshll.u32 %s215_s17, 6  ;;  %s761_s8 = scalar_lea.sflag [#allocation4], %s215_s17 }
  0x22   : > { %383 = vmatpush.msra.mxu1 %v1185_v28  ;;  %431 = vmatpush.msra.mxu3 %v1185_v28  ;;  %s1360_s16 = scalar_lea.vmem [#allocation3], %s840_s15 }
  0x23   : > { %308 = vmatpush.msra.mxu0 %v289_v16  ;;  %405 = vmatpush.msra.mxu2 %v1237_v44  ;;  %s774_s6 = sshll.u32 %s1360_s16, 4  ;;  %s775_s6 = int_to_ptr.vmem [resolvable:$true] %s774_s6 }
  0x24   : > { %384 = vmatpush.msra.mxu1 %v1192_v29  ;;  %432 = vmatpush.msra.mxu3 %v1192_v29 }
  0x25   : > { %309 = vmatpush.msra.mxu0 %v288_v17  ;;  %406 = vmatpush.msra.mxu2 %v1250_v45 }
  0x26   : > { %385 = vmatpush.msra.mxu1 %v1201_v30  ;;  %433 = vmatpush.msra.mxu3 %v1201_v30 }
  0x27   : > { %310 = vmatpush.msra.mxu0 %v287_v18  ;;  %407 = vmatpush.msra.mxu2 %v1257_v46 }
  0x28   : > { %252 = vperm.xlu0 %930, %v229_v20   ;;  %386 = vmatpush.msra.mxu1 %v1208_v31 }
  0x29   : > { %311 = vmatpush.msra.mxu0 %v286_v19  ;;  %387 = vmatmul.f32.vlgmr.msra.gmra.mxu1 %v1015_v32 }
  0x2a   : > { %434 = vmatpush.msra.mxu3 %v1208_v31  ;;  %452 = vmatpush.msrb.mxu1 %v1232_v43 }
  0x2b   : > { %312 = vmatpush.msra.mxu0 %v285_v21  ;;  %408 = vmatpush.msra.mxu2 %v1266_v47 }
  0x2c   : > { %501 = vmatpush.msrb.mxu3 %v1232_v43  ;;  %453 = vmatpush.msrb.mxu1 %v1237_v44 }
  0x2d   : > { %313 = vmatpush.msra.mxu0 %v284_v22  ;;  %409 = vmatpush.msra.mxu2 %v1274_v48 }
  0x2e   : > { %502 = vmatpush.msrb.mxu3 %v1237_v44  ;;  %454 = vmatpush.msrb.mxu1 %v1250_v45 }
  0x2f   : > { %314 = vmatpush.msra.mxu0 %v283_v23  ;;  %410 = vmatpush.msra.mxu2 %v1284_v49 }
  0x30   : > { %503 = vmatpush.msrb.mxu3 %v1250_v45  ;;  %455 = vmatpush.msrb.mxu1 %v1257_v46 }
  0x31   : > { %315 = vmatpush.msra.mxu0 %v282_v24  ;;  %411 = vmatpush.msra.mxu2 %v1293_v50 }
  0x32   : > { %504 = vmatpush.msrb.mxu3 %v1257_v46  ;;  %456 = vmatpush.msrb.mxu1 %v1266_v47 }
  0x33   : > { %316 = vmatpush.msra.mxu0 %v281_v25  ;;  %476 = vmatpush.msrb.mxu2 %v1109_v4 }
  0x34   : > { %505 = vmatpush.msrb.mxu3 %v1266_v47  ;;  %457 = vmatpush.msrb.mxu1 %v1274_v48 }
  0x35   : > { %746 = vmatpush.msrb.mxu0 %v1232_v43  ;;  %477 = vmatpush.msrb.mxu2 %v1126_v8 }
  0x36   : > { %506 = vmatpush.msrb.mxu3 %v1274_v48  ;;  %458 = vmatpush.msrb.mxu1 %v1284_v49 }
  0x37   : > { %747 = vmatpush.msrb.mxu0 %v1237_v44  ;;  %478 = vmatpush.msrb.mxu2 %v1174_v26 }
  0x38   : > { %507 = vmatpush.msrb.mxu3 %v1284_v49  ;;  %459 = vmatpush.msrb.mxu1 %v1293_v50 }
  0x39   : > { %748 = vmatpush.msrb.mxu0 %v1250_v45  ;;  %479 = vmatpush.msrb.mxu2 %v1180_v27 }
  0x3a   : > { %525 = vmatpush.msra.mxu1 %v1109_v4  ;;  %508 = vmatpush.msrb.mxu3 %v1293_v50 }
  0x3b   : > { %749 = vmatpush.msrb.mxu0 %v1257_v46  ;;  %480 = vmatpush.msrb.mxu2 %v1185_v28 }
  0x3c   : > { %526 = vmatpush.msra.mxu1 %v1126_v8  ;;  %255 = vperm.xlu1 %931, %v230_v56  }
  0x3d   : > { %750 = vmatpush.msrb.mxu0 %v1266_v47  ;;  %481 = vmatpush.msrb.mxu2 %v1192_v29 }
  0x3e   : > { %527 = vmatpush.msra.mxu1 %v1174_v26 }
  0x3f   : > { %751 = vmatpush.msrb.mxu0 %v1274_v48  ;;  %482 = vmatpush.msrb.mxu2 %v1201_v30 }
  0x40   : > { %528 = vmatpush.msra.mxu1 %v1180_v27 }
  0x41   : > { %752 = vmatpush.msrb.mxu0 %v1284_v49  ;;  %483 = vmatpush.msrb.mxu2 %v1208_v31 }
  0x42   : > { %529 = vmatpush.msra.mxu1 %v1185_v28 }
  0x43   : > { %753 = vmatpush.msrb.mxu0 %v1293_v50 }
  0x44   : > { %530 = vmatpush.msra.mxu1 %v1192_v29 }
  0x46   : > { %531 = vmatpush.msra.mxu1 %v1201_v30 }
  0x48   : > { %532 = vmatpush.msra.mxu1 %v1208_v31 }
  0x73   : > { %v247_v40 = vpop.permute.xlu2 %246 }
  0x74   : > { %vm261_vm4 = vcmp.eq.s32.totalorder %v1213_v34, %v247_v40 }
  0x7b   : > { %v250_v41 = vpop.permute.xlu2 %249 }
  0x7c   : > { %vm262_vm5 = vcmp.eq.s32.totalorder %v1213_v34, %v250_v41 }
  0x8a   : > { %v235_v35 = vpop.permute.xlu0 %234  ;;  %v241_v38 = vpop.permute.xlu1 %240 }
  0x8b   : > { %vm257_vm0 = vcmp.eq.s32.totalorder %v1213_v34, %v235_v35  ;;  %vm259_vm2 = vcmp.eq.s32.totalorder %v1213_v34, %v241_v38 }
  0x8c   : > { %851 = vmatmul.msk.f32.vlgmr.msra.gmra.mxu0 %vm257_vm0, %v1016_v36 }
  0x92   : > { %v238_v37 = vpop.permute.xlu0 %237  ;;  %v244_v39 = vpop.permute.xlu1 %243 }
  0x93   : > { %vm258_vm1 = vcmp.eq.s32.totalorder %v1213_v34, %v238_v37  ;;  %vm260_vm3 = vcmp.eq.s32.totalorder %v1213_v34, %v244_v39 }
  0x94   : > { %852 = vmatmul.msk.f32.gmra.mxu0 %vm258_vm1, %v1016_v36 }
  0x9a   : > { %v253_v42 = vpop.permute.xlu0 %252 }
  0x9b   : > { %vm263_vm6 = vcmp.eq.s32.totalorder %v1213_v34, %v253_v42 }
  0x9c   : > { %853 = vmatmul.msk.f32.gmra.mxu0 %vm259_vm2, %v1016_v36 }
  0xa4   : > { %854 = vmatmul.msk.f32.gmra.mxu0 %vm260_vm3, %v1016_v36 }
  0xa6   : > { %v388_v55 = vpop.f32.mrf.mxu1 }
  0xac   : > { %855 = vmatmul.msk.f32.gmra.mxu0 %vm261_vm4, %v1016_v36 }
  0xae   : > { %v256_v9 = vpop.permute.xlu1 %255 }
  0xaf   : > { %vm264_vm8 = vcmp.eq.s32.totalorder %v1213_v34, %v256_v9 }
  0xb4   : > { %856 = vmatmul.msk.f32.gmra.mxu0 %vm262_vm5, %v1016_v36 }
  0xbc   : > { %857 = vmatmul.msk.f32.gmra.mxu0 %vm263_vm6, %v1016_v36 }
  0xc4   : > { %858 = vmatmul.msk.f32.gmra.mxu0 %vm264_vm8, %v1016_v36 }
 0x109   : > { %v318_v52 = vpop.f32.mrf.mxu0 }
 0x10a   : > { %v319_v53 = vadd.f32 %v1314_v51, %v318_v52 }
 0x10c   : > { %343 = vst.msk [vmem:[#allocation2] sm:$0xff] %vm342_vm7, %v319_v53 }
 0x111   : > { %v321_v54 = vpop.f32.mrf.mxu0 }
 0x112   : > { %v322_v57 = vadd.f32 %v1314_v51, %v321_v54 }
 0x113   : > { %v367_v58 = vld [vmem:[#allocation2] sm:$0xff] }
 0x114   : > { %344 = vst.msk [vmem:[#allocation2 + $0x8] sm:$0xff] %vm342_vm7, %v322_v57  ;;  %v391_v59 = vadd.f32 %v388_v55, %v367_v58 }
 0x116   : > { %934 = vtanh.f32 %v391_v59 }
 0x119   : > { %v324_v60 = vpop.f32.mrf.mxu0 }
 0x11a   : > { %v325_v61 = vadd.f32 %v1314_v51, %v324_v60 }
 0x11b   : > { %v418_v11 = vld [vmem:[#allocation2 + $0x8] sm:$0xff] }
 0x11c   : > { %v935_v62 = vpop.eup %934  ;;  %345 = vst.msk [vmem:[#allocation2 + $0x10] sm:$0xff] %vm342_vm7, %v325_v61 }
 0x11d   : > { %859 = vmatmul.msk.f32.vlgmr.msra.gmra.mxu2 %vm342_vm7, %v935_v62  ;;  %860 = vmatmul.msk.f32.vlgmr.msra.gmra.mxu3 %vm342_vm7, %v935_v62 }
 0x11e   : > { %550 = vmatpush.msra.mxu2 %v1232_v43  ;;  %574 = vmatpush.msra.mxu3 %v1109_v4 }
 0x120   : > { %551 = vmatpush.msra.mxu2 %v1237_v44  ;;  %575 = vmatpush.msra.mxu3 %v1126_v8 }
 0x121   : > { %v327_v63 = vpop.f32.mrf.mxu0 }
 0x122   : > { %v328_v0 = vadd.f32 %v1314_v51, %v327_v63  ;;  %552 = vmatpush.msra.mxu2 %v1250_v45  ;;  %576 = vmatpush.msra.mxu3 %v1174_v26 }
 0x123   : > { %v467_v18 = vld [vmem:[#allocation2 + $0x10] sm:$0xff] }
 0x124   : > { %346 = vst.msk [vmem:[#allocation2 + $0x18] sm:$0xff] %vm342_vm7, %v328_v0  ;;  %553 = vmatpush.msra.mxu2 %v1257_v46  ;;  %577 = vmatpush.msra.mxu3 %v1180_v27 }
 0x126   : > { %554 = vmatpush.msra.mxu2 %v1266_v47  ;;  %578 = vmatpush.msra.mxu3 %v1185_v28 }
 0x128   : > { %555 = vmatpush.msra.mxu2 %v1274_v48  ;;  %579 = vmatpush.msra.mxu3 %v1192_v29 }
 0x129   : > { %v330_v1 = vpop.f32.mrf.mxu0 }
 0x12a   : > { %v331_v2 = vadd.f32 %v1314_v51, %v330_v1  ;;  %556 = vmatpush.msra.mxu2 %v1284_v49  ;;  %580 = vmatpush.msra.mxu3 %v1201_v30 }
 0x12b   : > { %v516_v22 = vld [vmem:[#allocation2 + $0x18] sm:$0xff] }
 0x12c   : > { %347 = vst.msk [vmem:[#allocation2 + $0x20] sm:$0xff] %vm342_vm7, %v331_v2  ;;  %557 = vmatpush.msra.mxu2 %v1293_v50  ;;  %581 = vmatpush.msra.mxu3 %v1208_v31 }
 0x131   : > { %v333_v3 = vpop.f32.mrf.mxu0 }
 0x132   : > { %v334_v5 = vadd.f32 %v1314_v51, %v333_v3 }
 0x134   : > { %348 = vst.msk [vmem:[#allocation2 + $0x28] sm:$0xff] %vm342_vm7, %v334_v5 }
 0x139   : > { %v336_v6 = vpop.f32.mrf.mxu0 }
 0x13a   : > { %v337_v7 = vadd.f32 %v1314_v51, %v336_v6 }
 0x13b   : > { %v614_v33 = vld [vmem:[#allocation2 + $0x28] sm:$0xff] }
 0x13c   : > { %349 = vst.msk [vmem:[#allocation2 + $0x30] sm:$0xff] %vm342_vm7, %v337_v7 }
 0x141   : > { %v339_v15 = vpop.f32.mrf.mxu0 }
 0x142   : > { %v340_v16 = vadd.f32 %v1314_v51, %v339_v15 }
 0x143   : > { %v663_v35 = vld [vmem:[#allocation2 + $0x30] sm:$0xff] }
 0x144   : > { %350 = vst.msk [vmem:[#allocation2 + $0x38] sm:$0xff] %vm342_vm7, %v340_v16 }
 0x14b   : > { %v712_v41 = vld [vmem:[#allocation2 + $0x38] sm:$0xff] }
 0x1a0   : > { %v413_v10 = vpop.f32.mrf.mxu2  ;;  %v436_v12 = vpop.f32.mrf.mxu3 }
 0x1a1   : > { %416 = vst [vmem:[%s1360_s16] sm:$0xff] %v413_v10  ;;  %v439_v13 = vadd.f32 %v436_v12, %v418_v11 }
 0x1a3   : > { %936 = vtanh.f32 %v439_v13 }
 0x1a9   : > { %v937_v14 = vpop.eup %936 }
 0x1aa   : > { %861 = vmatmul.msk.f32.vlgmr.msrb.gmra.mxu1 %vm342_vm7, %v937_v14  ;;  %863 = vmatmul.msk.f32.vlgmr.msrb.gmra.mxu2 %vm342_vm7, %v937_v14 }
 0x1ab   : > { %599 = vmatpush.msrb.mxu1 %v1232_v43  ;;  %623 = vmatpush.msrb.mxu2 %v1109_v4 }
 0x1ad   : > { %600 = vmatpush.msrb.mxu1 %v1237_v44  ;;  %624 = vmatpush.msrb.mxu2 %v1126_v8 }
 0x1af   : > { %601 = vmatpush.msrb.mxu1 %v1250_v45  ;;  %625 = vmatpush.msrb.mxu2 %v1174_v26 }
 0x1b1   : > { %602 = vmatpush.msrb.mxu1 %v1257_v46  ;;  %626 = vmatpush.msrb.mxu2 %v1180_v27 }
 0x1b3   : > { %603 = vmatpush.msrb.mxu1 %v1266_v47  ;;  %627 = vmatpush.msrb.mxu2 %v1185_v28 }
 0x1b5   : > { %604 = vmatpush.msrb.mxu1 %v1274_v48  ;;  %628 = vmatpush.msrb.mxu2 %v1192_v29 }
 0x1b7   : > { %605 = vmatpush.msrb.mxu1 %v1284_v49  ;;  %629 = vmatpush.msrb.mxu2 %v1201_v30 }
 0x1b9   : > { %606 = vmatpush.msrb.mxu1 %v1293_v50  ;;  %630 = vmatpush.msrb.mxu2 %v1208_v31 }
 0x227   : > { %v461_v17 = vpop.f32.mrf.mxu1 }
 0x228   : > { %862 = vst [vmem:[%s1360_s16 + $0x8] sm:$0xff] %v461_v17 }
 0x22d   : > { %v485_v19 = vpop.f32.mrf.mxu2 }
 0x22e   : > { %v488_v20 = vadd.f32 %v485_v19, %v467_v18 }
 0x230   : > { %938 = vtanh.f32 %v488_v20 }
 0x236   : > { %v939_v21 = vpop.eup %938 }
 0x237   : > { %864 = vmatmul.msk.f32.vlgmr.msrb.gmra.mxu3 %vm342_vm7, %v939_v21  ;;  %866 = vmatmul.msk.f32.vlgmr.msra.gmra.mxu1 %vm342_vm7, %v939_v21 }
 0x238   : > { %648 = vmatpush.msrb.mxu3 %v1232_v43  ;;  %672 = vmatpush.msra.mxu1 %v1109_v4 }
 0x23a   : > { %649 = vmatpush.msrb.mxu3 %v1237_v44  ;;  %673 = vmatpush.msra.mxu1 %v1126_v8 }
 0x23c   : > { %650 = vmatpush.msrb.mxu3 %v1250_v45  ;;  %674 = vmatpush.msra.mxu1 %v1174_v26 }
 0x23e   : > { %651 = vmatpush.msrb.mxu3 %v1257_v46  ;;  %675 = vmatpush.msra.mxu1 %v1180_v27 }
 0x240   : > { %652 = vmatpush.msrb.mxu3 %v1266_v47  ;;  %676 = vmatpush.msra.mxu1 %v1185_v28 }
 0x242   : > { %653 = vmatpush.msrb.mxu3 %v1274_v48  ;;  %677 = vmatpush.msra.mxu1 %v1192_v29 }
 0x244   : > { %654 = vmatpush.msrb.mxu3 %v1284_v49  ;;  %678 = vmatpush.msra.mxu1 %v1201_v30 }
 0x246   : > { %655 = vmatpush.msrb.mxu3 %v1293_v50  ;;  %679 = vmatpush.msra.mxu1 %v1208_v31 }
 0x2b4   : > { %v534_v23 = vpop.f32.mrf.mxu1 }
 0x2b5   : > { %v537_v24 = vadd.f32 %v534_v23, %v516_v22 }
 0x2b7   : > { %940 = vtanh.f32 %v537_v24 }
 0x2ba   : > { %v510_v25 = vpop.f32.mrf.mxu3 }
 0x2bb   : > { %865 = vst [vmem:[%s1360_s16 + $0x10] sm:$0xff] %v510_v25 }
 0x2bd   : > { %v941_v32 = vpop.eup %940 }
 0x2be   : > { %867 = vmatmul.msk.f32.vlgmr.msra.gmra.mxu2 %vm342_vm7, %v941_v32  ;;  %869 = vmatmul.msk.f32.vlgmr.msra.gmra.mxu3 %vm342_vm7, %v941_v32 }
 0x2bf   : > { %697 = vmatpush.msra.mxu2 %v1232_v43  ;;  %721 = vmatpush.msra.mxu3 %v1109_v4  ;;  %v565_v4 = vld [vmem:[#allocation2 + $0x20] sm:$0xff] }
 0x2c1   : > { %698 = vmatpush.msra.mxu2 %v1237_v44  ;;  %722 = vmatpush.msra.mxu3 %v1126_v8 }
 0x2c3   : > { %699 = vmatpush.msra.mxu2 %v1250_v45  ;;  %723 = vmatpush.msra.mxu3 %v1174_v26 }
 0x2c5   : > { %700 = vmatpush.msra.mxu2 %v1257_v46  ;;  %724 = vmatpush.msra.mxu3 %v1180_v27 }
 0x2c7   : > { %701 = vmatpush.msra.mxu2 %v1266_v47  ;;  %725 = vmatpush.msra.mxu3 %v1185_v28 }
 0x2c9   : > { %702 = vmatpush.msra.mxu2 %v1274_v48  ;;  %726 = vmatpush.msra.mxu3 %v1192_v29 }
 0x2cb   : > { %703 = vmatpush.msra.mxu2 %v1284_v49  ;;  %727 = vmatpush.msra.mxu3 %v1201_v30 }
 0x2cd   : > { %704 = vmatpush.msra.mxu2 %v1293_v50  ;;  %728 = vmatpush.msra.mxu3 %v1208_v31 }
 0x341   : > { %v559_v8 = vpop.f32.mrf.mxu2  ;;  %v583_v26 = vpop.f32.mrf.mxu3 }
 0x342   : > { %868 = vst [vmem:[%s1360_s16 + $0x18] sm:$0xff] %v559_v8  ;;  %v586_v27 = vadd.f32 %v583_v26, %v565_v4 }
 0x344   : > { %942 = vtanh.f32 %v586_v27 }
 0x34a   : > { %v943_v28 = vpop.eup %942 }
 0x34b   : > { %870 = vmatmul.msk.f32.vlgmr.msrb.gmra.mxu1 %vm342_vm7, %v943_v28  ;;  %872 = vmatmul.msk.f32.vlgmr.msrb.gmra.mxu2 %vm342_vm7, %v943_v28 }
 0x3c8   : > { %v608_v29 = vpop.f32.mrf.mxu1 }
 0x3c9   : > { %871 = vst [vmem:[%s1360_s16 + $0x20] sm:$0xff] %v608_v29 }
 0x3ce   : > { %v632_v30 = vpop.f32.mrf.mxu2 }
 0x3cf   : > { %v635_v34 = vadd.f32 %v632_v30, %v614_v33 }
 0x3d1   : > { %944 = vtanh.f32 %v635_v34 }
 0x3d7   : > { %v945_v31 = vpop.eup %944 }
 0x3d8   : > { %873 = vmatmul.msk.f32.vlgmr.msrb.gmra.mxu3 %vm342_vm7, %v945_v31  ;;  %875 = vmatmul.msk.f32.vlgmr.msra.gmra.mxu1 %vm342_vm7, %v945_v31 }
 0x455   : > { %v681_v36 = vpop.f32.mrf.mxu1 }
 0x456   : > { %v684_v37 = vadd.f32 %v681_v36, %v663_v35 }
 0x458   : > { %946 = vtanh.f32 %v684_v37 }
 0x45b   : > { %v657_v38 = vpop.f32.mrf.mxu3 }
 0x45c   : > { %874 = vst [vmem:[%s1360_s16 + $0x28] sm:$0xff] %v657_v38 }
 0x45e   : > { %v947_v39 = vpop.eup %946 }
 0x45f   : > { %876 = vmatmul.msk.f32.vlgmr.msra.gmra.mxu2 %vm342_vm7, %v947_v39  ;;  %878 = vmatmul.msk.f32.vlgmr.msra.gmra.mxu3 %vm342_vm7, %v947_v39 }
 0x4e2   : > { %v706_v40 = vpop.f32.mrf.mxu2  ;;  %v730_v42 = vpop.f32.mrf.mxu3 }
 0x4e3   : > { %877 = vst [vmem:[%s1360_s16 + $0x30] sm:$0xff] %v706_v40  ;;  %v733_v43 = vadd.f32 %v730_v42, %v712_v41 }
 0x4e5   : > { %948 = vtanh.f32 %v733_v43 }
 0x4eb   : > { %v949_v44 = vpop.eup %948 }
 0x4ec   : > { %879 = vmatmul.msk.f32.vlgmr.msrb.gmra.mxu0 %vm342_vm7, %v949_v44 }
 0x569   : > { %v755_v45 = vpop.f32.mrf.mxu0 }
 0x56a   : > { %880 = vst [vmem:[%s1360_s16 + $0x38] sm:$0xff] %v755_v45 }
 0x56b   : > { %977 = shalt.err (!%p974_p3)
}
 0x56c   : > { %888 = dma.vmem_to_hbm [thread:$0]  (%p1085_p5), %s775_s6, 1024, %s777_s7, %s761_s8  }
 0x56d PF: > { %p894_p4 = scmp.ge.s32.totalorder %s1012_s21, 2  ;;  %s788_s17 = sand.u32 1, %s1000_s18  }
 0x56e   : > { %s789_s15 = scalar_lea.sflag [#allocation4], %s788_s17 }
 0x56f   : > { %p891_p7 = pnand %p894_p4, %p1089_p6 }
 0x571   : > { %p892_p8 = pneg %p891_p7 }
 0x573   : > { %995 = dma.done.wait (%p892_p8), %s789_s15, 1024  }
 0x574   : > { %997 = vsyncadd (%p892_p8), %s789_s15, 4294966272  ;;  %p15_p9 = scmp.ge.s32.totalorder %s1072_s24, 4   ;;  %s1475_s18 = smov %s1004_s19 }
 0x575   : > { %s1476_s19 = smov %s1008_s20  ;;  %s1477_s20 = smov %s1083_s27 }
 0x576   : > { %s1478_s21 = smov %s1072_s24  ;;  %17 = sbr.rel (!%p15_p9) target bundleno = 3 (0x3), region = 89 }
 0x57b   :  { %795 = vsyncpa [#allocation4], 1 }
 0x57c   :  { %797 = vsyncpa [#allocation4 + $0x1], 1 }

</bundles_post_ra>
